<compile_context>
chip_gen: v7x
topology: tpu7x:2x2x1
jax: 0.10.0
libtpu: 0.0.40
codegen_flags: <defaults>
</compile_context>

<pallas_src>
import functools

import jax
import jax.numpy as jnp
from jax.experimental import pallas as pl
from jax.experimental.pallas import tpu as pltpu


# ----------------------------------------------------------------------------
# Tiling planners (shared by weight packing at init and the matmul wrapper)
# ----------------------------------------------------------------------------
def _round_up(x, m):
    return (x + m - 1) // m * m


_MAX_TM = 512     # sublane-dim tile cap for the activation rows
_MAX_TN = 512     # lane-dim tile cap for output channels
_MAX_TK = 4096    # reduction tile cap


def _plan_m(M):
    Mr = _round_up(M, 8)
    if Mr <= _MAX_TM:
        return Mr, Mr
    return _MAX_TM, _round_up(Mr, _MAX_TM)


def _plan_n(N):
    Nr = _round_up(N, 128)
    if Nr <= _MAX_TN:
        return Nr, Nr
    return _MAX_TN, _round_up(Nr, _MAX_TN)


def _plan_k(K):
    Kr = _round_up(K, 128)
    if Kr <= _MAX_TK:
        return Kr, Kr
    chunks = -(-Kr // _MAX_TK)
    tk = _round_up(-(-Kr // chunks), 128)
    return tk, tk * chunks


# ----------------------------------------------------------------------------
# Pallas kernels
# ----------------------------------------------------------------------------
def _mm_bias_act_kernel(x_ref, w_ref, b_ref, o_ref, *, act):
    """bf16 x bf16 -> fp32 matmul, accumulating directly in the resident output
    block; bias + activation fused on the last reduction step."""
    k = pl.program_id(2)

    @pl.when(k == 0)
    def _():
        o_ref[...] = jnp.zeros_like(o_ref)

    o_ref[...] += jnp.dot(x_ref[...], w_ref[...],
                          preferred_element_type=jnp.float32)

    @pl.when(k == pl.num_programs(2) - 1)
    def _():
        y = o_ref[...] + b_ref[...]            # (tm,tn) + (1,tn) broadcast
        if act == "leaky_relu":
            y = jnp.where(y > 0, y, 0.1 * y)   # negative_slope=0.1 (as in spec)
        elif act == "sigmoid":
            y = jax.nn.sigmoid(y)
        o_ref[...] = y


def matmul_bias_act(x, w_packed, b_packed, K, N, act="none"):
    """y = act(x @ W + b).  x:(M,K) any float dtype; w_packed:(Kp,Np) bf16 and
    b_packed:(1,Np) fp32 are pre-padded at init.  Returns (M,N) fp32."""
    M, Kx = x.shape
    assert Kx == K
    tm, Mp = _plan_m(M)
    tk, Kp = _plan_k(K)
    tn, Np = _plan_n(N)
    assert w_packed.shape == (Kp, Np), (w_packed.shape, (Kp, Np))
    assert b_packed.shape == (1, Np)

    x = x.astype(jnp.bfloat16)
    if (M, K) != (Mp, Kp):
        x = jnp.pad(x, ((0, Mp - M), (0, Kp - K)))

    grid = (Mp // tm, Np // tn, Kp // tk)
    out = pl.pallas_call(
        functools.partial(_mm_bias_act_kernel, act=act),
        out_shape=jax.ShapeDtypeStruct((Mp, Np), jnp.float32),
        grid_spec=pltpu.PrefetchScalarGridSpec(
            num_scalar_prefetch=0,
            grid=grid,
            in_specs=[
                pl.BlockSpec((tm, tk), lambda i, j, k: (i, k)),
                pl.BlockSpec((tk, tn), lambda i, j, k: (k, j)),
                pl.BlockSpec((1, tn), lambda i, j, k: (0, j)),
            ],
            out_specs=pl.BlockSpec((tm, tn), lambda i, j, k: (i, j)),
        ),
        compiler_params=pltpu.CompilerParams(
            dimension_semantics=("parallel", "parallel", "arbitrary"),
            vmem_limit_bytes=32 * 1024 * 1024),
    )(x, w_packed, b_packed)
    return out[:M, :N]


def _maxpool_kernel(x00_ref, x01_ref, x10_ref, x11_ref, o_ref):
    o_ref[...] = jnp.maximum(jnp.maximum(x00_ref[...], x01_ref[...]),
                             jnp.maximum(x10_ref[...], x11_ref[...]))


def maxpool2x2(x):
    """MaxPool2d(kernel=2, stride=2) on NHWC input (H, W even here)."""
    N, H, W, C = x.shape
    H2, W2 = H // 2, W // 2
    x = x.astype(jnp.bfloat16)
    # Four strided sub-grids (cheap XLA slices), elementwise max in the kernel.
    parts = [x[:, di::2, dj::2, :].reshape(N, H2 * W2, C)
             for di in (0, 1) for dj in (0, 1)]
    spec = pl.BlockSpec((1, H2 * W2, C), lambda n: (n, 0, 0))
    out = pl.pallas_call(
        _maxpool_kernel,
        out_shape=jax.ShapeDtypeStruct((N, H2 * W2, C), jnp.bfloat16),
        grid_spec=pltpu.PrefetchScalarGridSpec(
            num_scalar_prefetch=0,
            grid=(N,),
            in_specs=[spec] * 4,
            out_specs=spec,
        ),
        compiler_params=pltpu.CompilerParams(
            dimension_semantics=("parallel",),
            vmem_limit_bytes=32 * 1024 * 1024),
    )(*parts)
    return out.reshape(N, H2, W2, C)


# ----------------------------------------------------------------------------
# Convolution = (im2col for 3x3 / plain reshape for 1x1) + Pallas matmul
# ----------------------------------------------------------------------------
def _im2col(x, kh, kw, stride, pad):
    N, H, W, C = x.shape
    xp = jnp.pad(x, ((0, 0), (pad, pad), (pad, pad), (0, 0)))
    Hp, Wp = H + 2 * pad, W + 2 * pad
    OH = (Hp - kh) // stride + 1
    OW = (Wp - kw) // stride + 1
    cols = []
    for i in range(kh):
        for j in range(kw):
            cols.append(xp[:, i:i + stride * (OH - 1) + 1:stride,
                           j:j + stride * (OW - 1) + 1:stride, :])
    p = jnp.stack(cols, axis=3)                       # (N, OH, OW, kh*kw, C)
    return p.reshape(N * OH * OW, kh * kw * C), (N, OH, OW)


def conv2d(x, w_packed, b_packed, in_ch, out_ch, k, stride, pad,
           act="leaky_relu"):
    """x NHWC; weights pre-packed at init to (k*k*in_ch, out_ch) bf16."""
    x = x.astype(jnp.bfloat16)
    N, H, W, C = x.shape
    assert C == in_ch
    if k == 1:
        # 1x1 conv: no im2col needed; just spatial zero-pad + reshape.
        xp = jnp.pad(x, ((0, 0), (pad, pad), (pad, pad), (0, 0)))
        xp = xp[:, ::stride, ::stride, :]
        Nb, OH, OW, _ = xp.shape
        cols = xp.reshape(Nb * OH * OW, C)
    else:
        cols, (Nb, OH, OW) = _im2col(x, k, k, stride, pad)
    y = matmul_bias_act(cols, w_packed, b_packed,
                        K=k * k * in_ch, N=out_ch, act=act)
    return y.reshape(Nb, OH, OW, out_ch)


# ----------------------------------------------------------------------------
# Model definition (mirrors MyFaceDetector.__init__ / forward)
# ----------------------------------------------------------------------------
#                 (out_ch, in_ch, k, stride, pad)
CONV_CFG = [
    (64, 3, 7, 2, 1), (192, 64, 3, 1, 1), (128, 192, 1, 1, 1), (256, 128, 3, 1, 1),
    (256, 256, 1, 1, 1), (512, 256, 3, 1, 1), (256, 512, 1, 1, 1), (512, 256, 3, 1, 1),
    (256, 512, 1, 1, 1), (512, 256, 3, 1, 1), (256, 512, 1, 1, 1), (512, 256, 3, 1, 1),
    (256, 512, 1, 1, 1), (512, 256, 3, 1, 1), (512, 512, 1, 1, 1), (1024, 512, 3, 1, 1),
    (512, 1024, 1, 1, 1), (1024, 512, 3, 1, 1), (512, 1024, 1, 1, 1), (1024, 512, 3, 1, 1),
    (1024, 1024, 3, 1, 1), (1024, 1024, 3, 2, 1), (1024, 1024, 3, 1, 1), (1024, 1024, 3, 1, 1),
]
POOL_AFTER = {1, 2, 6, 16}        # maxpool2d(2,2) follows these conv layers
FEAT_DIM = 1024 * 8 * 8           # 65536, as in the PyTorch module


def _pack_weight(w_mat, K, N):
    """(K, N) fp -> bf16 padded to the tile grid (done once at init)."""
    _tk, Kp = _plan_k(K)
    _tn, Np = _plan_n(N)
    return jnp.pad(w_mat.astype(jnp.bfloat16), ((0, Kp - K), (0, Np - N)))


def _pack_bias(b, N):
    _tn, Np = _plan_n(N)
    return jnp.pad(b.astype(jnp.float32), ((0, Np - N),)).reshape(1, Np)


def init_params(key):
    params = {}
    for idx, (o, c, k, _s, _p) in enumerate(CONV_CFG, start=1):
        key, sub = jax.random.split(key)
        kk = c * k * k
        std = (2.0 / kk) ** 0.5
        # Generate in PyTorch (O, C, kh, kw) layout, then pack once:
        w = jax.random.normal(sub, (o, c, k, k), jnp.float32) * std
        w_mat = jnp.transpose(w, (2, 3, 1, 0)).reshape(kk, o)   # (kh*kw*C, O)
        params[f"conv{idx}_w"] = _pack_weight(w_mat, kk, o)
        params[f"conv{idx}_b"] = _pack_bias(jnp.zeros((o,), jnp.float32), o)

    def linear(k_, din, dout):
        std = (2.0 / din) ** 0.5
        w = jax.random.normal(k_, (din, dout), jnp.bfloat16) * std
        return _pack_weight(w, din, dout), _pack_bias(jnp.zeros((dout,)), dout)

    key, k1, k2, k3, k4 = jax.random.split(key, 5)
    params["bbox_w1"], params["bbox_b1"] = linear(k1, FEAT_DIM, 4096)
    params["bbox_w2"], params["bbox_b2"] = linear(k2, 4096, 4)
    params["cls_w1"], params["cls_b1"] = linear(k3, FEAT_DIM, 4096)
    params["cls_w2"], params["cls_b2"] = linear(k4, 4096, 1)
    return params


def forward(params, x_nchw):
    x = jnp.transpose(x_nchw, (0, 2, 3, 1)).astype(jnp.bfloat16)   # NCHW -> NHWC
    for idx, (o, c, k, s, p) in enumerate(CONV_CFG, start=1):
        x = conv2d(x, params[f"conv{idx}_w"], params[f"conv{idx}_b"],
                   in_ch=c, out_ch=o, k=k, stride=s, pad=p, act="leaky_relu")
        if idx in POOL_AFTER:
            x = maxpool2x2(x)

    # nn.Flatten on NCHW ordering: transpose back before flattening.
    n = x.shape[0]
    feat = jnp.transpose(x.astype(jnp.bfloat16), (0, 3, 1, 2)).reshape(n, -1)

    # bbox head: Linear -> LeakyReLU -> Dropout(identity) -> Linear
    h = matmul_bias_act(feat, params["bbox_w1"], params["bbox_b1"],
                        K=FEAT_DIM, N=4096, act="leaky_relu")
    # TODO(synk): Dropout(p=0.5) is identity (inference mode).
    bbox = matmul_bias_act(h, params["bbox_w2"], params["bbox_b2"],
                           K=4096, N=4, act="none")

    # classify head: Linear -> LeakyReLU -> Dropout(identity) -> Linear -> Sigmoid
    h2 = matmul_bias_act(feat, params["cls_w1"], params["cls_b1"],
                         K=FEAT_DIM, N=4096, act="leaky_relu")
    label = matmul_bias_act(h2, params["cls_w2"], params["cls_b2"],
                            K=4096, N=1, act="sigmoid")
    return bbox, label


if __name__ == "__main__":
    # Input spatial size 163 is the smallest size for which the network's
    # conv/pool arithmetic produces the 1024x8x8 feature map expected by the
    # Linear(1024*8*8, ...) heads (padding=1 on the 1x1 convs grows H/W by 2).
    x = jax.random.normal(jax.random.PRNGKey(0), (2, 3, 163, 163), jnp.float32)
    params = init_params(jax.random.PRNGKey(1))

    bbox, label = forward(params, x)
    (bbox, label) = jax.block_until_ready((bbox, label))

    assert bbox.shape == (2, 4), bbox.shape
    assert label.shape == (2, 1), label.shape
    assert bool(jnp.all(jnp.isfinite(bbox)))
    assert bool(jnp.all((label >= 0.0) & (label <= 1.0)))
    print("KERNEL_OK")
</pallas_src>

<mosaic_0001>
module attributes {stable_mosaic.version = 11 : i64} {
  func.func @_mm_bias_act_kernel(%arg0: i32, %arg1: i32, %arg2: i32, %arg3: memref<512x256xbf16, #tpu.memory_space<vmem>>, %arg4: memref<256x128xbf16, #tpu.memory_space<vmem>>, %arg5: memref<1x128xf32, #tpu.memory_space<vmem>>, %arg6: memref<512x128xf32, #tpu.memory_space<vmem>>) attributes {dimension_semantics = [#tpu.dimension_semantics<parallel>, #tpu.dimension_semantics<parallel>, #tpu.dimension_semantics<arbitrary>], iteration_bounds = array<i64: 25, 1, 1>, scalar_prefetch = 0 : i64, scratch_operands = 0 : i64, tpu.core_type = #tpu.core_type<tc>, window_params = [{transform_indices = @transform_0, window_bounds = array<i64: 512, 256>}, {transform_indices = @transform_1, window_bounds = array<i64: 256, 128>}, {transform_indices = @transform_2, window_bounds = array<i64: 1, 128>}, {transform_indices = @transform_3, window_bounds = array<i64: 512, 128>}]} {
    %c0_i32 = arith.constant 0 : i32
    %0 = arith.cmpi eq, %arg2, %c0_i32 : i32
    %1 = arith.extui %0 : i1 to i32
    %c0_i32_0 = arith.constant 0 : i32
    %2 = arith.cmpi ne, %1, %c0_i32_0 : i32
    scf.if %2 {
      %cst_10 = arith.constant 0.000000e+00 : f32
      %12 = vector.broadcast %cst_10 : f32 to vector<512x128xf32>
      %c0_11 = arith.constant 0 : index
      %c0_12 = arith.constant 0 : index
      %13 = vector.load %arg6[%c0_11, %c0_12] : memref<512x128xf32, #tpu.memory_space<vmem>>, vector<512x128xf32>
      tpu.vector_store %arg6[%c0_11, %c0_12], %12 {strides = array<i32>} : memref<512x128xf32, #tpu.memory_space<vmem>>, vector<512x128xf32>,
    } else {
    }
    %c0 = arith.constant 0 : index
    %c0_1 = arith.constant 0 : index
    %3 = vector.load %arg6[%c0, %c0_1] : memref<512x128xf32, #tpu.memory_space<vmem>>, vector<512x128xf32>
    %c0_2 = arith.constant 0 : index
    %c0_3 = arith.constant 0 : index
    %4 = vector.load %arg3[%c0_2, %c0_3] : memref<512x256xbf16, #tpu.memory_space<vmem>>, vector<512x256xbf16>
    %c0_4 = arith.constant 0 : index
    %c0_5 = arith.constant 0 : index
    %5 = vector.load %arg4[%c0_4, %c0_5] : memref<256x128xbf16, #tpu.memory_space<vmem>>, vector<256x128xbf16>
    %cst = arith.constant dense<0.000000e+00> : vector<512x128xf32>
    %6 = tpu.matmul %4, %5, %cst {dimension_numbers = #tpu.dot_dimension_numbers<[1], [0], [0], [1], [0, 0, 1, 1], [], []>} : vector<512x256xbf16>, vector<256x128xbf16>, vector<512x128xf32> -> vector<512x128xf32>
    %7 = arith.addf %3, %6 : vector<512x128xf32>
    %c0_6 = arith.constant 0 : index
    %c0_7 = arith.constant 0 : index
    %8 = vector.load %arg6[%c0_6, %c0_7] : memref<512x128xf32, #tpu.memory_space<vmem>>, vector<512x128xf32>
    tpu.vector_store %arg6[%c0_6, %c0_7], %7 {strides = array<i32>} : memref<512x128xf32, #tpu.memory_space<vmem>>, vector<512x128xf32>,
    %c0_i32_8 = arith.constant 0 : i32
    %9 = arith.cmpi eq, %arg2, %c0_i32_8 : i32
    %10 = arith.extui %9 : i1 to i32
    %c0_i32_9 = arith.constant 0 : i32
    %11 = arith.cmpi ne, %10, %c0_i32_9 : i32
    scf.if %11 {
      %c0_10 = arith.constant 0 : index
      %c0_11 = arith.constant 0 : index
      %12 = vector.load %arg6[%c0_10, %c0_11] : memref<512x128xf32, #tpu.memory_space<vmem>>, vector<512x128xf32>
      %c0_12 = arith.constant 0 : index
      %c0_13 = arith.constant 0 : index
      %13 = vector.load %arg5[%c0_12, %c0_13] : memref<1x128xf32, #tpu.memory_space<vmem>>, vector<1x128xf32>
      %14 = vector.broadcast %13 : vector<1x128xf32> to vector<512x128xf32>
      %15 = arith.addf %12, %14 : vector<512x128xf32>
      %cst_14 = arith.constant 0.000000e+00 : f32
      %16 = vector.broadcast %cst_14 : f32 to vector<512x128xf32>
      %17 = arith.cmpf ogt, %15, %16 : vector<512x128xf32>
      %cst_15 = arith.constant 1.000000e-01 : f32
      %18 = vector.broadcast %cst_15 : f32 to vector<512x128xf32>
      %19 = arith.mulf %18, %15 : vector<512x128xf32>
      %20 = arith.select %17, %15, %19 : vector<512x128xi1>, vector<512x128xf32>
      %c0_16 = arith.constant 0 : index
      %c0_17 = arith.constant 0 : index
      %21 = vector.load %arg6[%c0_16, %c0_17] : memref<512x128xf32, #tpu.memory_space<vmem>>, vector<512x128xf32>
      tpu.vector_store %arg6[%c0_16, %c0_17], %20 {strides = array<i32>} : memref<512x128xf32, #tpu.memory_space<vmem>>, vector<512x128xf32>,
    } else {
    }
    return
  }
  func.func @transform_0(%arg0: i32, %arg1: i32, %arg2: i32) -> (i32, i32) {
    %c0_i32 = arith.constant 0 : i32
    return %arg0, %arg2 : i32, i32
  }
  func.func @transform_1(%arg0: i32, %arg1: i32, %arg2: i32) -> (i32, i32) {
    %c0_i32 = arith.constant 0 : i32
    return %arg2, %arg1 : i32, i32
  }
  func.func @transform_2(%arg0: i32, %arg1: i32, %arg2: i32) -> (i32, i32) {
    %c0_i32 = arith.constant 0 : i32
    %c0_i32_0 = arith.constant 0 : i32
    return %c0_i32, %arg1 : i32, i32
  }
  func.func @transform_3(%arg0: i32, %arg1: i32, %arg2: i32) -> (i32, i32) {
    %c0_i32 = arith.constant 0 : i32
    return %arg0, %arg1 : i32, i32
  }
}

</mosaic_0001>

<bundles_post_ra>
// kernel: tpu_custom_call.1
= control target key start
LH: loop header
LB: loop body
LE: loop exit
PB: predicated region body
PF: predicated region fallthrough
CT: control target
= control target key end

     0   :  { %8 = vsyncpa [#allocation3], 0  ;;  %s2875_s0 = inlined_call_operand.hbm [shape: bf16[12800,256], index: 0, kind: input, shape index: {}]   ;;  %s2876_s1 = inlined_call_operand.hbm [shape: bf16[256,128], index: 1, kind: input, shape index: {}]   ;;  %s2877_s2 = inlined_call_operand.hbm [shape: f32[1,128], index: 2, kind: input, shape index: {}]   ;;  %s2878_s3 = inlined_call_operand.hbm [shape: f32[12800,128], index: 3, kind: output, shape index: {}]  }
   0x1   :  { %10 = vsyncpa [#allocation3 + $0x1], 0 }
   0x2   :  { %11 = vsyncpa [#allocation6], 0 }
   0x3   :  { %12 = vsyncpa [#allocation4], 0 }
   0x4   :  { %14 = vsyncpa [#allocation4 + $0x1], 0  ;;  %s2393_s12 = smov 0   ;;  %s2395_s13 = smov 0  }
   0x5   :  { %s2397_s14 = smov 0   ;;  %s2399_s15 = smov 0  }
   0x6   :  { %s2401_s16 = smov 0   ;;  %s2403_s17 = smov 0  }
   0x7 LB: > { %s1849_s18 = sadd.s32 4294967295, %s2360_s17   ;;  %s1850_s19 = sadd.s32 4294967294, %s2360_s17   ;;  %s2360_s17 = sphi %s2403_s17, %s20_s17   ;;  %s2356_s16 = sphi %s2401_s16, %s2900_s16   ;;  %s2352_s15 = sphi %s2399_s15, %s2899_s15   ;;  %s2348_s14 = sphi %s2397_s14, %s2898_s14   ;;  %s2344_s13 = sphi %s2395_s13, %s2897_s13   ;;  %s2340_s12 = sphi %s2393_s12, %s2896_s12  }
   0x8   : > { %p61_p0 = scmp.ne.s32.totalorder %s2344_s13, %s2340_s12  ;;  %p2427_p1 = scmp.eq.s32.totalorder %s1849_s18, 0 }
   0x9   : > { %p2431_p2 = scmp.eq.s32.totalorder %s1849_s18, 24  ;;  %p147_p3 = scmp.eq.s32.totalorder %s1850_s19, 24 }
   0xa   : > { %s2883_s20 = scalar_select %p2427_p1, 1, 0 }
   0xb   : > { %s2884_s21 = scalar_select %p2431_p2, 1, 0 }
   0xc   : > { %p2437_p4 = por %p2427_p1, %p61_p0  ;;  %p1851_p5 = scmp.ge.s32.totalorder %s2360_s17, 1 }
   0xd   : > { %p2442_p6 = por %p147_p3, %p61_p0  ;;  %p154_p7 = scmp.lt.s32.totalorder %s2360_s17, 26 }
   0xe   : > { %s2885_s22 = scalar_select %p2437_p4, 1, 0 }
   0xf   : > { %s2886_s23 = scalar_select %p2442_p6, 1, 0 }
  0x10   : > { %p2447_p8 = pnand %p1851_p5, %p154_p7  ;;  %s2362_s25 = smov [#allocation5]  }
  0x11   : > { %s170_s26 = sshll.u32 %s2362_s25, 4  ;;  %s2363_s28 = smov [#allocation7]   ;;  %s171_s26 = int_to_ptr.vmem [resolvable:$true] %s170_s26 }
  0x12   : > { %s2887_s24 = scalar_select %p2447_p8, 1, 0 }
  0x13   : > { %p1997_p9 = pneg %p2447_p8  ;;  %s186_s29 = sshll.u32 %s2363_s28, 4  ;;  %s2459_s29 = int_to_ptr.vmem [resolvable:$true] %s186_s29 }
  0x14   : > { %s2188_s5 = scalar_lea.hbm %s2876_s1, 2048 }
  0x15   : > { %p2455_p10 = pnand %p1997_p9, %p2427_p1  ;;  %p2189_p11 = scmp.ne.s32.totalorder %s2876_s1, %s2188_s5 }
  0x16   : > { %p2195_p3 = scmp.lt.u32.totalorder %s2188_s5, %s2876_s1 }
  0x17   : > { %p2190_p12 = pneg %p2455_p10 }
  0x19   : > { %p2191_p13 = pnand %p2190_p12, %p2189_p11 }
  0x1b   : > { %p2192_p0 = pneg %p2191_p13 }
  0x1d   : > { %p2197_p5 = pnand %p2195_p3, %p2192_p0 }
  0x1f   : > { %2200 = shalt.err (!%p2197_p5)
}
  0x20   : > { %s2201_s10 = scalar_lea.vmem %s171_s26, 2048  ;;  %p2209_p1 = scmp.lt.s32.totalorder %s171_s26, %s171_s26 }
  0x21   : > { %p2202_p7 = scmp.ne.s32.totalorder %s171_s26, %s2201_s10  ;;  %p2210_p4 = scmp.lt.s32.totalorder %s2201_s10, %s2201_s10 }
  0x23   : > { %p2204_p9 = pnand %p2202_p7, %p2190_p12  ;;  %p2211_p8 = por %p2210_p4, %p2209_p1 }
  0x25   : > { %p2205_p6 = pneg %p2204_p9 }
  0x27   : > { %p2212_p2 = pnand %p2211_p8, %p2205_p6 }
  0x29   : > { %2215 = shalt.err (!%p2212_p2)
}
  0x2a   : > { %s2364_s11 = smov 64   ;;  %s2365_s18 = smov 4  }
  0x2b   : > { %2000 = dma.hbm_to_vmem [thread:$0]  (!%p2455_p10), %s2876_s1, 2048, %s171_s26, [#allocation6], %s2364_s11, %s2364_s11, %s2365_s18  }
  0x2c   : > { %s2216_s4 = scalar_lea.hbm %s2877_s2, 16 }
  0x2d   : > { %p2217_p11 = scmp.ne.s32.totalorder %s2877_s2, %s2216_s4  ;;  %p2223_p4 = scmp.lt.u32.totalorder %s2216_s4, %s2877_s2 }
  0x2f   : > { %p2219_p1 = pnand %p2217_p11, %p2190_p12 }
  0x31   : > { %p2220_p2 = pneg %p2219_p1 }
  0x33   : > { %p2225_p6 = pnand %p2223_p4, %p2220_p2 }
  0x35   : > { %2228 = shalt.err (!%p2225_p6)
}
  0x36   : > { %s2229_s26 = scalar_lea.vmem %s2459_s29, 16  ;;  %s2236_s9 = scalar_lea.vmem %s2459_s29, 32 }
  0x37   : > { %p2230_p8 = scmp.ne.s32.totalorder %s2459_s29, %s2229_s26  ;;  %p2237_p3 = scmp.lt.s32.totalorder %s2459_s29, %s2459_s29 }
  0x38   : > { %p2238_p5 = scmp.lt.s32.totalorder %s2236_s9, %s2229_s26 }
  0x39   : > { %p2232_p13 = pnand %p2230_p8, %p2190_p12 }
  0x3a   : > { %p2239_p7 = por %p2238_p5, %p2237_p3 }
  0x3b   : > { %p2233_p0 = pneg %p2232_p13 }
  0x3d   : > { %p2240_p9 = pnand %p2239_p7, %p2233_p0 }
  0x3f   : > { %2243 = shalt.err (!%p2240_p9)
}
  0x40   : > { %2003 = dma.hbm_to_vmem [thread:$0]  (!%p2455_p10), %s2877_s2, 16, %s2459_s29, [#allocation6]  }
  0x41   : > { %s39_s18 = sadd.s32 1, %s2356_s16  ;;  %s48_s19 = sadd.s32 1, %s2348_s14 }
  0x42   : > { %p41_p12 = scmp.ge.s32.totalorder %s39_s18, 25  ;;  %p55_p11 = scmp.ne.s32.totalorder %s2348_s14, %s2344_s13 }
  0x43   : > { %p56_p1 = scmp.eq.s32.totalorder %s2360_s17, 0  ;;  %p2014_p2 = scmp.lt.s32.totalorder %s2360_s17, 25 }
  0x44   : > { %s2902_s18 = smov (%p41_p12, %s39_s18), 0  ;;  %p2889_p6 = scmp.ne.s32.totalorder %s2884_s21, 0 }
  0x45   : > { %p57_p4 = por %p56_p1, %p55_p11  ;;  %s43_s25 = ssub.s32 %s2356_s16, %s2902_s18 }
  0x46   : > { %p2519_p8 = por %p2889_p6, %p55_p11  ;;  %s197_s28 = sand.u32 1, %s2348_s14  }
  0x47   : > { %p46_p13 = scmp.eq.s32.totalorder %s43_s25, 0  ;;  %s1855_s29 = sshll.u32 %s197_s28, 9 }
  0x48   : > { %s1951_s30 = sshll.u32 %s2356_s16, 13  ;;  %s201_s21 = scalar_lea.vmem [#allocation2], %s1855_s29 }
  0x49   : > { %s2528_s4 = scalar_select %p46_p13, %s2348_s14, %s48_s19  }
  0x4a   : > { %s2533_s7 = scalar_lea.hbm %s2875_s0, %s1951_s30  ;;  %s211_s8 = sshll.u32 %s201_s21, 4  ;;  %s2541_s8 = int_to_ptr.vmem [resolvable:$true] %s211_s8 }
  0x4b   : > { %p2537_p10 = pnand %p2014_p2, %p57_p4  ;;  %s2543_s9 = scalar_lea.sflag [#allocation3], %s197_s28 }
  0x4c   : > { %s2244_s10 = scalar_lea.hbm %s2533_s7, 8192  ;;  %s2249_s25 = scalar_lea.hbm %s2875_s0, 204800 }
  0x4d   : > { %p2245_p0 = scmp.ne.s32.totalorder %s2533_s7, %s2244_s10  ;;  %p2246_p3 = pneg %p2537_p10 }
  0x4e   : > { %p2250_p9 = scmp.lt.u32.totalorder %s2533_s7, %s2875_s0  ;;  %p2251_p12 = scmp.lt.u32.totalorder %s2249_s25, %s2244_s10 }
  0x4f   : > { %p2247_p5 = pnand %p2246_p3, %p2245_p0  ;;  %p2253_p1 = scmp.lt.u32.totalorder %s2244_s10, %s2533_s7 }
  0x50   : > { %p2252_p11 = por %p2251_p12, %p2250_p9 }
  0x51   : > { %p2248_p7 = pneg %p2247_p5 }
  0x52   : > { %p2254_p2 = por %p2253_p1, %p2252_p11 }
  0x54   : > { %p2255_p4 = pnand %p2254_p2, %p2248_p7 }
  0x56   : > { %2258 = shalt.err (!%p2255_p4)
}
  0x57   : > { %s2259_s28 = scalar_lea.vmem %s2541_s8, 8192  ;;  %s2366_s5 = smov [#allocation2]  }
  0x58   : > { %p2260_p6 = scmp.ne.s32.totalorder %s2541_s8, %s2259_s28  ;;  %s2264_s6 = sshll.u32 %s2366_s5, 4  ;;  %s2265_s6 = int_to_ptr.vmem [resolvable:$false] %s2264_s6 }
  0x59   : > { %s2266_s21 = scalar_lea.vmem %s2265_s6, 16384  ;;  %p2267_p5 = scmp.lt.s32.totalorder %s2541_s8, %s2265_s6 }
  0x5a   : > { %p2262_p13 = pnand %p2260_p6, %p2246_p3  ;;  %p2268_p9 = scmp.lt.s32.totalorder %s2266_s21, %s2259_s28 }
  0x5c   : > { %p2263_p0 = pneg %p2262_p13  ;;  %p2269_p12 = por %p2268_p9, %p2267_p5 }
  0x5e   : > { %p2270_p11 = pnand %p2269_p12, %p2263_p0 }
  0x60   : > { %2273 = shalt.err (!%p2270_p11)
}
  0x61   : > { %s2367_s10 = smov 128   ;;  %s2368_s11 = smov 8  }
  0x62   : > { %2007 = dma.hbm_to_vmem [thread:$0]  (!%p2537_p10), %s2533_s7, 8192, %s2541_s8, %s2543_s9, %s2367_s10, %s2367_s10, %s2368_s11  }
  0x63   : > { %p2892_p3 = scmp.ne.s32.totalorder %s2887_s24, 0 }
  0x64   : > { %s2574_s19 = sand.u32 (!%p2892_p3), 1, %s2344_s13   ;;  %p2893_p7 = scmp.ne.s32.totalorder (!%p2892_p3), %s2885_s22, 0 }
  0x65   : > { %223 = sbr.rel (%p2892_p3) target bundleno = 532 (0x214), region = 32  ;;  %s1860_s25 = sshll.u32 (!%p2892_p3), %s2574_s19, 9 }
  0x66   : > { %s226_s29 = scalar_lea.sflag (!%p2892_p3), [#allocation3], %s2574_s19  ;;  %s2580_s30 = scalar_lea.vmem (!%p2892_p3), [#allocation2], %s1860_s25 }
  0x6c   : > { %2327 = dma.done.wait (%p2893_p7), %s226_s29, 8192  }
  0x6d   : > { %2329 = vsyncadd (%p2893_p7), %s226_s29, 4294959104  ;;  %p2894_p10 = scmp.ne.s32.totalorder %s2883_s20, 0 }
  0x6f   : > { %2331 = dma.done.wait (%p2894_p10), [#allocation6], 2064  }
  0x70   : > { %2333 = vsyncadd (%p2894_p10), [#allocation6], 4294965232  ;;  %v2369_v0 = vmov 0   ;;  %v2076_v1 = vld [vmem:[#allocation5] sm:$0xff]   ;;  %v2077_v2 = vld [vmem:[#allocation5 + $0x8] sm:$0xff]   ;;  %s2694_s20 = scalar_lea.vmem [#allocation8], %s1860_s25 }
  0x71   : > { %909 = vmatprep.subr.bf16.mxu0 %v2369_v0  ;;  %1953 = vmatprep.subr.bf16.mxu1 %v2369_v0  ;;  %v2078_v3 = vld [vmem:[#allocation5 + $0x10] sm:$0xff]   ;;  %v2079_v4 = vld [vmem:[#allocation5 + $0x18] sm:$0xff]   ;;  %v2080_v5 = vld [vmem:[#allocation5 + $0x20] sm:$0xff]   ;;  %s1952_s22 = sshll.u32 %s2352_s15, 13  ;;  %s1735_s24 = sshll.u32 %s2694_s20, 4  ;;  %s2825_s24 = int_to_ptr.vmem [resolvable:$true] %s1735_s24 }
  0x72   : > { %910 = vmatpush1.bf16.msra.mxu0 %v2076_v1  ;;  %1969 = vmatpush1.bf16.msra.mxu1 %v2076_v1  ;;  %v2094_v6 = vld [vmem:[%s2580_s30 + $0x4] ss:$8 sps:$4 sm:$0xff]   ;;  %v2082_v9 = vld [vmem:[#allocation5 + $0x30] sm:$0xff]   ;;  %v2083_v10 = vld [vmem:[#allocation5 + $0x38] sm:$0xff]   ;;  %s2823_s8 = scalar_lea.hbm %s2878_s3, %s1952_s22  ;;  %s1721_s26 = scalar_lea.sflag [#allocation4], %s2574_s19 }
  0x73   : > { %911 = vmatprep.subr.bf16.mxu0 %v2369_v0  ;;  %1954 = vmatprep.subr.bf16.mxu1 %v2369_v0  ;;  %v2081_v7 = vld [vmem:[#allocation5 + $0x28] sm:$0xff]   ;;  %v2084_v11 = vld [vmem:[#allocation5 + $0x40] sm:$0xff]   ;;  %v2086_v13 = vld [vmem:[#allocation5 + $0x50] sm:$0xff]   ;;  %s2274_s9 = scalar_lea.vmem %s2825_s24, 8192  ;;  %s2370_s28 = smov [#allocation8]  }
  0x74   : > { %v2097_v8 = vld [vmem:[%s2580_s30 + $0x104] ss:$8 sps:$4 sm:$0xff]   ;;  %941 = vmatprep.mubr.bf16.mxu0 %v2094_v6  ;;  %v2087_v14 = vld [vmem:[#allocation5 + $0x58] sm:$0xff]   ;;  %v2090_v17 = vld [vmem:[#allocation5 + $0x70] sm:$0xff]   ;;  %p2275_p1 = scmp.ne.s32.totalorder %s2825_s24, %s2274_s9  ;;  %s2278_s5 = sshll.u32 %s2370_s28, 4  ;;  %s2279_s5 = int_to_ptr.vmem [resolvable:$false] %s2278_s5 }
  0x75   : > { %1069 = vmatprep.mubr.bf16.mxu1 %v2097_v8  ;;  %v2085_v12 = vld [vmem:[#allocation5 + $0x48] sm:$0xff]   ;;  %v2088_v15 = vld [vmem:[#allocation5 + $0x60] sm:$0xff]   ;;  %v2091_v18 = vld [vmem:[#allocation5 + $0x78] sm:$0xff]   ;;  %s2280_s6 = scalar_lea.vmem %s2279_s5, 16384  ;;  %p2281_p6 = scmp.lt.s32.totalorder %s2825_s24, %s2279_s5 }
  0x76   : > { %912 = vmatpush1.bf16.msra.mxu0 %v2077_v2  ;;  %1970 = vmatpush1.bf16.msra.mxu1 %v2077_v2  ;;  %v2089_v16 = vld [vmem:[#allocation5 + $0x68] sm:$0xff]   ;;  %v2098_v21 = vld [vmem:[%s2580_s30 + $0x14] ss:$8 sps:$4 sm:$0xff]   ;;  %v2102_v23 = vld [vmem:[%s2580_s30 + $0x10] ss:$8 sps:$4 sm:$0xff]   ;;  %p2276_p2 = pnand %p2275_p1, %p2519_p8  ;;  %p2282_p13 = scmp.lt.s32.totalorder %s2280_s6, %s2274_s9 }
  0x77   : > { %913 = vmatprep.subr.bf16.mxu0 %v2369_v0  ;;  %1955 = vmatprep.subr.bf16.mxu1 %v2369_v0  ;;  %v2092_v19 = vld [vmem:[%s2580_s30] ss:$8 sps:$4 sm:$0xff]   ;;  %v2100_v22 = vld [vmem:[%s2580_s30 + $0x114] ss:$8 sps:$4 sm:$0xff]   ;;  %v2103_v24 = vld [vmem:[%s2580_s30 + $0x110] ss:$8 sps:$4 sm:$0xff]  }
  0x78   : > { %v2095_v20 = vld [vmem:[%s2580_s30 + $0x100] ss:$8 sps:$4 sm:$0xff]   ;;  %v2104_v25 = vld [vmem:[%s2580_s30 + $0x24] ss:$8 sps:$4 sm:$0xff]   ;;  %v2110_v29 = vld [vmem:[%s2580_s30 + $0x34] ss:$8 sps:$4 sm:$0xff]   ;;  %p2277_p4 = pneg %p2276_p2  ;;  %p2283_p0 = por %p2282_p13, %p2281_p6 }
  0x79   : > { %v2106_v26 = vld [vmem:[%s2580_s30 + $0x124] ss:$8 sps:$4 sm:$0xff]   ;;  %v2108_v27 = vld [vmem:[%s2580_s30 + $0x20] ss:$8 sps:$4 sm:$0xff]   ;;  %v2112_v30 = vld [vmem:[%s2580_s30 + $0x134] ss:$8 sps:$4 sm:$0xff]  }
  0x7a   : > { %914 = vmatpush1.bf16.msra.mxu0 %v2078_v3  ;;  %1971 = vmatpush1.bf16.msra.mxu1 %v2078_v3  ;;  %v2109_v28 = vld [vmem:[%s2580_s30 + $0x120] ss:$8 sps:$4 sm:$0xff]   ;;  %v2114_v31 = vld [vmem:[%s2580_s30 + $0x30] ss:$8 sps:$4 sm:$0xff]   ;;  %v2116_v33 = vld [vmem:[%s2580_s30 + $0x44] ss:$8 sps:$4 sm:$0xff]   ;;  %p2284_p5 = pnand %p2283_p0, %p2277_p4 }
  0x7b   : > { %915 = vmatprep.subr.bf16.mxu0 %v2369_v0  ;;  %1956 = vmatprep.subr.bf16.mxu1 %v2369_v0  ;;  %v2115_v32 = vld [vmem:[%s2580_s30 + $0x130] ss:$8 sps:$4 sm:$0xff]   ;;  %v2118_v34 = vld [vmem:[%s2580_s30 + $0x144] ss:$8 sps:$4 sm:$0xff]   ;;  %v2120_v35 = vld [vmem:[%s2580_s30 + $0x40] ss:$8 sps:$4 sm:$0xff]  }
  0x7c   : > { %v2121_v36 = vld [vmem:[%s2580_s30 + $0x140] ss:$8 sps:$4 sm:$0xff]   ;;  %v2122_v37 = vld [vmem:[%s2580_s30 + $0x54] ss:$8 sps:$4 sm:$0xff]   ;;  %v2126_v39 = vld [vmem:[%s2580_s30 + $0x50] ss:$8 sps:$4 sm:$0xff]  }
  0x7d   : > { %v2124_v38 = vld [vmem:[%s2580_s30 + $0x154] ss:$8 sps:$4 sm:$0xff]   ;;  %v2127_v40 = vld [vmem:[%s2580_s30 + $0x150] ss:$8 sps:$4 sm:$0xff]   ;;  %v2128_v41 = vld [vmem:[%s2580_s30 + $0x64] ss:$8 sps:$4 sm:$0xff]  }
  0x7e   : > { %916 = vmatpush1.bf16.msra.mxu0 %v2079_v4  ;;  %1972 = vmatpush1.bf16.msra.mxu1 %v2079_v4  ;;  %v2130_v42 = vld [vmem:[%s2580_s30 + $0x164] ss:$8 sps:$4 sm:$0xff]   ;;  %v2132_v43 = vld [vmem:[%s2580_s30 + $0x60] ss:$8 sps:$4 sm:$0xff]   ;;  %v2134_v45 = vld [vmem:[%s2580_s30 + $0x74] ss:$8 sps:$4 sm:$0xff]  }
  0x7f   : > { %917 = vmatprep.subr.bf16.mxu0 %v2369_v0  ;;  %1957 = vmatprep.subr.bf16.mxu1 %v2369_v0  ;;  %v2133_v44 = vld [vmem:[%s2580_s30 + $0x160] ss:$8 sps:$4 sm:$0xff]   ;;  %v2136_v46 = vld [vmem:[%s2580_s30 + $0x174] ss:$8 sps:$4 sm:$0xff]   ;;  %v2138_v47 = vld [vmem:[%s2580_s30 + $0x70] ss:$8 sps:$4 sm:$0xff]  }
  0x80   : > { %v2139_v48 = vld [vmem:[%s2580_s30 + $0x170] ss:$8 sps:$4 sm:$0xff]   ;;  %v2140_v49 = vld [vmem:[%s2580_s30 + $0x84] ss:$8 sps:$4 sm:$0xff]   ;;  %v2144_v51 = vld [vmem:[%s2580_s30 + $0x80] ss:$8 sps:$4 sm:$0xff]  }
  0x81   : > { %v2142_v50 = vld [vmem:[%s2580_s30 + $0x184] ss:$8 sps:$4 sm:$0xff]   ;;  %v2145_v52 = vld [vmem:[%s2580_s30 + $0x180] ss:$8 sps:$4 sm:$0xff]   ;;  %v2146_v53 = vld [vmem:[%s2580_s30 + $0x94] ss:$8 sps:$4 sm:$0xff]  }
  0x82   : > { %918 = vmatpush1.bf16.msra.mxu0 %v2080_v5  ;;  %1973 = vmatpush1.bf16.msra.mxu1 %v2080_v5  ;;  %v2148_v54 = vld [vmem:[%s2580_s30 + $0x194] ss:$8 sps:$4 sm:$0xff]   ;;  %v2150_v55 = vld [vmem:[%s2580_s30 + $0x90] ss:$8 sps:$4 sm:$0xff]   ;;  %v2152_v57 = vld [vmem:[%s2580_s30 + $0xa4] ss:$8 sps:$4 sm:$0xff]  }
  0x83   : > { %919 = vmatprep.subr.bf16.mxu0 %v2369_v0  ;;  %1958 = vmatprep.subr.bf16.mxu1 %v2369_v0  ;;  %v2151_v56 = vld [vmem:[%s2580_s30 + $0x190] ss:$8 sps:$4 sm:$0xff]   ;;  %v2154_v58 = vld [vmem:[%s2580_s30 + $0x1a4] ss:$8 sps:$4 sm:$0xff]   ;;  %v2156_v59 = vld [vmem:[%s2580_s30 + $0xa0] ss:$8 sps:$4 sm:$0xff]  }
  0x84   : > { %v2157_v60 = vld [vmem:[%s2580_s30 + $0x1a0] ss:$8 sps:$4 sm:$0xff]   ;;  %v2158_v61 = vld [vmem:[%s2580_s30 + $0xb4] ss:$8 sps:$4 sm:$0xff]   ;;  %v2162_v63 = vld [vmem:[%s2580_s30 + $0xb0] ss:$8 sps:$4 sm:$0xff]  }
  0x85   : > { %v2160_v62 = vld [vmem:[%s2580_s30 + $0x1b4] ss:$8 sps:$4 sm:$0xff]   ;;  %v2164_v1 = vld [vmem:[%s2580_s30 + $0xc4] ss:$8 sps:$4 sm:$0xff]   ;;  %v2168_v3 = vld [vmem:[%s2580_s30 + $0xc0] ss:$8 sps:$4 sm:$0xff]  }
  0x86   : > { %920 = vmatpush1.bf16.msra.mxu0 %v2081_v7  ;;  %1974 = vmatpush1.bf16.msra.mxu1 %v2081_v7  ;;  %v2166_v2 = vld [vmem:[%s2580_s30 + $0x1c4] ss:$8 sps:$4 sm:$0xff]   ;;  %v2169_v4 = vld [vmem:[%s2580_s30 + $0x1c0] ss:$8 sps:$4 sm:$0xff]   ;;  %v2170_v5 = vld [vmem:[%s2580_s30 + $0xd4] ss:$8 sps:$4 sm:$0xff]  }
  0x87   : > { %921 = vmatprep.subr.bf16.mxu0 %v2369_v0  ;;  %1959 = vmatprep.subr.bf16.mxu1 %v2369_v0  ;;  %v2172_v6 = vld [vmem:[%s2580_s30 + $0x1d4] ss:$8 sps:$4 sm:$0xff]   ;;  %v2174_v7 = vld [vmem:[%s2580_s30 + $0xd0] ss:$8 sps:$4 sm:$0xff]  }
  0x88   : > { %v2175_v8 = vld [vmem:[%s2580_s30 + $0x1d0] ss:$8 sps:$4 sm:$0xff]  }
  0x8a   : > { %922 = vmatpush1.bf16.msra.mxu0 %v2082_v9  ;;  %1975 = vmatpush1.bf16.msra.mxu1 %v2082_v9  ;;  %v2176_v9 = vld [vmem:[%s2580_s30 + $0xe4] ss:$8 sps:$4 sm:$0xff]  }
  0x8b   : > { %923 = vmatprep.subr.bf16.mxu0 %v2369_v0  ;;  %1960 = vmatprep.subr.bf16.mxu1 %v2369_v0 }
  0x8e   : > { %924 = vmatpush1.bf16.msra.mxu0 %v2083_v10  ;;  %1976 = vmatpush1.bf16.msra.mxu1 %v2083_v10  ;;  %v2178_v10 = vld [vmem:[%s2580_s30 + $0x1e4] ss:$8 sps:$4 sm:$0xff]  }
  0x8f   : > { %925 = vmatprep.subr.bf16.mxu0 %v2369_v0  ;;  %1961 = vmatprep.subr.bf16.mxu1 %v2369_v0 }
  0x92   : > { %926 = vmatpush1.bf16.msra.mxu0 %v2084_v11  ;;  %1977 = vmatpush1.bf16.msra.mxu1 %v2084_v11  ;;  %v2180_v11 = vld [vmem:[%s2580_s30 + $0xe0] ss:$8 sps:$4 sm:$0xff]  }
  0x93   : > { %927 = vmatprep.subr.bf16.mxu0 %v2369_v0  ;;  %1962 = vmatprep.subr.bf16.mxu1 %v2369_v0 }
  0x96   : > { %928 = vmatpush1.bf16.msra.mxu0 %v2085_v12  ;;  %1978 = vmatpush1.bf16.msra.mxu1 %v2085_v12  ;;  %v2181_v12 = vld [vmem:[%s2580_s30 + $0x1e0] ss:$8 sps:$4 sm:$0xff]  }
  0x97   : > { %929 = vmatprep.subr.bf16.mxu0 %v2369_v0  ;;  %1963 = vmatprep.subr.bf16.mxu1 %v2369_v0 }
  0x9a   : > { %930 = vmatpush1.bf16.msra.mxu0 %v2086_v13  ;;  %1979 = vmatpush1.bf16.msra.mxu1 %v2086_v13  ;;  %v2182_v13 = vld [vmem:[%s2580_s30 + $0xf4] ss:$8 sps:$4 sm:$0xff]  }
  0x9b   : > { %931 = vmatprep.subr.bf16.mxu0 %v2369_v0  ;;  %1964 = vmatprep.subr.bf16.mxu1 %v2369_v0 }
  0x9e   : > { %932 = vmatpush1.bf16.msra.mxu0 %v2087_v14  ;;  %1980 = vmatpush1.bf16.msra.mxu1 %v2087_v14  ;;  %v2184_v14 = vld [vmem:[%s2580_s30 + $0x1f4] ss:$8 sps:$4 sm:$0xff]  }
  0x9f   : > { %933 = vmatprep.subr.bf16.mxu0 %v2369_v0  ;;  %1965 = vmatprep.subr.bf16.mxu1 %v2369_v0 }
  0xa2   : > { %934 = vmatpush1.bf16.msra.mxu0 %v2088_v15  ;;  %1981 = vmatpush1.bf16.msra.mxu1 %v2088_v15  ;;  %v2186_v15 = vld [vmem:[%s2580_s30 + $0xf0] ss:$8 sps:$4 sm:$0xff]  }
  0xa3   : > { %935 = vmatprep.subr.bf16.mxu0 %v2369_v0  ;;  %1966 = vmatprep.subr.bf16.mxu1 %v2369_v0 }
  0xa6   : > { %936 = vmatpush1.bf16.msra.mxu0 %v2089_v16  ;;  %1982 = vmatpush1.bf16.msra.mxu1 %v2089_v16  ;;  %v2187_v16 = vld [vmem:[%s2580_s30 + $0x1f0] ss:$8 sps:$4 sm:$0xff]  }
  0xa7   : > { %937 = vmatprep.subr.bf16.mxu0 %v2369_v0  ;;  %1967 = vmatprep.subr.bf16.mxu1 %v2369_v0 }
  0xaa   : > { %938 = vmatpush1.bf16.msra.mxu0 %v2090_v17  ;;  %1983 = vmatpush1.bf16.msra.mxu1 %v2090_v17 }
  0xab   : > { %939 = vmatprep.subr.bf16.mxu0 %v2369_v0  ;;  %1968 = vmatprep.subr.bf16.mxu1 %v2369_v0  ;;  %v2163_v0 = vld [vmem:[%s2580_s30 + $0x1b0] ss:$8 sps:$4 sm:$0xff]  }
  0xae   : > { %940 = vmatpush1.bf16.msra.mxu0 %v2091_v18  ;;  %1984 = vmatpush1.bf16.msra.mxu1 %v2091_v18  ;;  %v2686_v18 = vld [vmem:[#allocation7] ss:$0 sm:$0xff] }
  0xb1   : > { %942 = vmatmul.mubr.bf16.vlgmr.msra.gmra.mrb[0].mxu0 %v2092_v19  ;;  %1070 = vmatmul.mubr.bf16.vlgmr.msra.gmra.mrb[0].mxu1 %v2095_v20 }
  0xb2   : > { %949 = vmatprep.mubr.bf16.mxu0 %v2098_v21  ;;  %1077 = vmatprep.mubr.bf16.mxu1 %v2100_v22 }
  0xb9   : > { %950 = vmatmul.mubr.bf16.gmra.mrb[4].mxu0 %v2102_v23  ;;  %1078 = vmatmul.mubr.bf16.gmra.mrb[4].mxu1 %v2103_v24 }
  0xba   : > { %957 = vmatprep.mubr.bf16.mxu0 %v2104_v25  ;;  %1085 = vmatprep.mubr.bf16.mxu1 %v2106_v26 }
  0xc1   : > { %958 = vmatmul.mubr.bf16.gmra.mrb[8].mxu0 %v2108_v27  ;;  %1086 = vmatmul.mubr.bf16.gmra.mrb[8].mxu1 %v2109_v28 }
  0xc2   : > { %965 = vmatprep.mubr.bf16.mxu0 %v2110_v29  ;;  %1093 = vmatprep.mubr.bf16.mxu1 %v2112_v30 }
  0xc9   : > { %966 = vmatmul.mubr.bf16.gmra.mrb[12].mxu0 %v2114_v31  ;;  %1094 = vmatmul.mubr.bf16.gmra.mrb[12].mxu1 %v2115_v32 }
  0xca   : > { %973 = vmatprep.mubr.bf16.mxu0 %v2116_v33  ;;  %1101 = vmatprep.mubr.bf16.mxu1 %v2118_v34 }
  0xd1   : > { %974 = vmatmul.mubr.bf16.gmra.mrb[16].mxu0 %v2120_v35  ;;  %1102 = vmatmul.mubr.bf16.gmra.mrb[16].mxu1 %v2121_v36 }
  0xd2   : > { %981 = vmatprep.mubr.bf16.mxu0 %v2122_v37  ;;  %1109 = vmatprep.mubr.bf16.mxu1 %v2124_v38 }
  0xd9   : > { %982 = vmatmul.mubr.bf16.gmra.mrb[20].mxu0 %v2126_v39  ;;  %1110 = vmatmul.mubr.bf16.gmra.mrb[20].mxu1 %v2127_v40 }
  0xda   : > { %989 = vmatprep.mubr.bf16.mxu0 %v2128_v41  ;;  %1117 = vmatprep.mubr.bf16.mxu1 %v2130_v42 }
  0xe1   : > { %990 = vmatmul.mubr.bf16.gmra.mrb[24].mxu0 %v2132_v43  ;;  %1118 = vmatmul.mubr.bf16.gmra.mrb[24].mxu1 %v2133_v44 }
  0xe2   : > { %997 = vmatprep.mubr.bf16.mxu0 %v2134_v45  ;;  %1125 = vmatprep.mubr.bf16.mxu1 %v2136_v46 }
  0xe9   : > { %998 = vmatmul.mubr.bf16.gmra.mrb[28].mxu0 %v2138_v47  ;;  %1126 = vmatmul.mubr.bf16.gmra.mrb[28].mxu1 %v2139_v48 }
  0xea   : > { %1005 = vmatprep.mubr.bf16.mxu0 %v2140_v49  ;;  %1133 = vmatprep.mubr.bf16.mxu1 %v2142_v50 }
  0xf1   : > { %1006 = vmatmul.mubr.bf16.gmra.mrb[32].mxu0 %v2144_v51  ;;  %1134 = vmatmul.mubr.bf16.gmra.mrb[32].mxu1 %v2145_v52 }
  0xf2   : > { %1013 = vmatprep.mubr.bf16.mxu0 %v2146_v53  ;;  %1141 = vmatprep.mubr.bf16.mxu1 %v2148_v54 }
  0xf9   : > { %1014 = vmatmul.mubr.bf16.gmra.mrb[36].mxu0 %v2150_v55  ;;  %1142 = vmatmul.mubr.bf16.gmra.mrb[36].mxu1 %v2151_v56 }
  0xfa   : > { %1021 = vmatprep.mubr.bf16.mxu0 %v2152_v57  ;;  %1149 = vmatprep.mubr.bf16.mxu1 %v2154_v58 }
 0x101   : > { %1022 = vmatmul.mubr.bf16.gmra.mrb[40].mxu0 %v2156_v59  ;;  %1150 = vmatmul.mubr.bf16.gmra.mrb[40].mxu1 %v2157_v60 }
 0x102   : > { %1029 = vmatprep.mubr.bf16.mxu0 %v2158_v61  ;;  %1157 = vmatprep.mubr.bf16.mxu1 %v2160_v62 }
 0x109   : > { %1030 = vmatmul.mubr.bf16.gmra.mrb[44].mxu0 %v2162_v63  ;;  %1158 = vmatmul.mubr.bf16.gmra.mrb[44].mxu1 %v2163_v0 }
 0x10a   : > { %1037 = vmatprep.mubr.bf16.mxu0 %v2164_v1  ;;  %1165 = vmatprep.mubr.bf16.mxu1 %v2166_v2 }
 0x111   : > { %1038 = vmatmul.mubr.bf16.gmra.mrb[48].mxu0 %v2168_v3  ;;  %1166 = vmatmul.mubr.bf16.gmra.mrb[48].mxu1 %v2169_v4 }
 0x112   : > { %1045 = vmatprep.mubr.bf16.mxu0 %v2170_v5  ;;  %1173 = vmatprep.mubr.bf16.mxu1 %v2172_v6 }
 0x119   : > { %1046 = vmatmul.mubr.bf16.gmra.mrb[52].mxu0 %v2174_v7  ;;  %1174 = vmatmul.mubr.bf16.gmra.mrb[52].mxu1 %v2175_v8 }
 0x11a   : > { %1053 = vmatprep.mubr.bf16.mxu0 %v2176_v9  ;;  %1181 = vmatprep.mubr.bf16.mxu1 %v2178_v10 }
 0x121   : > { %1054 = vmatmul.mubr.bf16.gmra.mrb[56].mxu0 %v2180_v11  ;;  %1182 = vmatmul.mubr.bf16.gmra.mrb[56].mxu1 %v2181_v12 }
 0x122   : > { %1061 = vmatprep.mubr.bf16.mxu0 %v2182_v13  ;;  %1189 = vmatprep.mubr.bf16.mxu1 %v2184_v14 }
 0x129   : > { %1062 = vmatmul.mubr.bf16.gmra.mrb[60].mxu0 %v2186_v15  ;;  %1190 = vmatmul.mubr.bf16.gmra.mrb[60].mxu1 %v2187_v16 }
 0x184   : > { %v943_v17 = vpop.f32.mrb[0].mxu0  ;;  %v1071_v19 = vpop.f32.mrb[0].mxu1 }
 0x185   : > { %v945_v20 = vpop.f32.mrb[1].mxu0  ;;  %v1073_v21 = vpop.f32.mrb[1].mxu1  ;;  %v1400_v24 = vadd.f32 %v2686_v18, %v943_v17  ;;  %v1432_v25 = vadd.f32 %v2686_v18, %v1071_v19 }
 0x186   : > { %v946_v22 = vpop.f32.mrb[2].mxu0  ;;  %v1074_v23 = vpop.f32.mrb[2].mxu1 }
 0x187   : > { %v948_v26 = vpop.f32.mrb[3].mxu0  ;;  %v1076_v27 = vpop.f32.mrb[3].mxu1  ;;  %vm1464_vm0 = vcmp.gt.f32.partialorder %v1400_v24, 0.0  ;;  %v1528_v28 = vmul.f32 0.1, %v1400_v24  ;;  %vm1496_vm1 = vcmp.gt.f32.partialorder %v1432_v25, 0.0  ;;  %v1401_v30 = vadd.f32 %v2686_v18, %v946_v22 }
 0x188   : > { %v1560_v29 = vmul.f32 0.1, %v1432_v25  ;;  %v1433_v31 = vadd.f32 %v2686_v18, %v1074_v23 }
 0x189   : > { %v1592_v32 = vsel %vm1464_vm0, %v1400_v24, %v1528_v28  ;;  %vm1465_vm2 = vcmp.gt.f32.partialorder %v1401_v30, 0.0  ;;  %v1529_v34 = vmul.f32 0.1, %v1401_v30 }
 0x18a   : > { %v1624_v33 = vsel %vm1496_vm1, %v1432_v25, %v1560_v29  ;;  %1656 = vst [vmem:[%s2694_s20] sm:$0xff] %v1592_v32  ;;  %vm1497_vm3 = vcmp.gt.f32.partialorder %v1433_v31, 0.0  ;;  %v1561_v35 = vmul.f32 0.1, %v1433_v31 }
 0x18b   : > { %1688 = vst [vmem:[%s2694_s20 + $0x100] sm:$0xff] %v1624_v33  ;;  %v1593_v38 = vsel %vm1465_vm2, %v1401_v30, %v1529_v34 }
 0x18c   : > { %v951_v36 = vpop.f32.mrb[4].mxu0  ;;  %v1079_v37 = vpop.f32.mrb[4].mxu1  ;;  %v1625_v39 = vsel %vm1497_vm3, %v1433_v31, %v1561_v35  ;;  %1657 = vst [vmem:[%s2694_s20 + $0x8] sm:$0xff] %v1593_v38 }
 0x18d   : > { %v953_v40 = vpop.f32.mrb[5].mxu0  ;;  %v1081_v41 = vpop.f32.mrb[5].mxu1  ;;  %1689 = vst [vmem:[%s2694_s20 + $0x108] sm:$0xff] %v1625_v39  ;;  %v1402_v44 = vadd.f32 %v2686_v18, %v951_v36  ;;  %v1434_v45 = vadd.f32 %v2686_v18, %v1079_v37 }
 0x18e   : > { %v954_v42 = vpop.f32.mrb[6].mxu0  ;;  %v1082_v43 = vpop.f32.mrb[6].mxu1 }
 0x18f   : > { %v956_v46 = vpop.f32.mrb[7].mxu0  ;;  %v1084_v47 = vpop.f32.mrb[7].mxu1  ;;  %vm1466_vm4 = vcmp.gt.f32.partialorder %v1402_v44, 0.0  ;;  %v1530_v48 = vmul.f32 0.1, %v1402_v44  ;;  %vm1498_vm5 = vcmp.gt.f32.partialorder %v1434_v45, 0.0  ;;  %v1403_v50 = vadd.f32 %v2686_v18, %v954_v42 }
 0x190   : > { %v1562_v49 = vmul.f32 0.1, %v1434_v45  ;;  %v1435_v51 = vadd.f32 %v2686_v18, %v1082_v43 }
 0x191   : > { %v1594_v52 = vsel %vm1466_vm4, %v1402_v44, %v1530_v48  ;;  %vm1467_vm6 = vcmp.gt.f32.partialorder %v1403_v50, 0.0  ;;  %v1531_v56 = vmul.f32 0.1, %v1403_v50 }
 0x192   : > { %v1626_v53 = vsel %vm1498_vm5, %v1434_v45, %v1562_v49  ;;  %1658 = vst [vmem:[%s2694_s20 + $0x10] sm:$0xff] %v1594_v52  ;;  %vm1499_vm7 = vcmp.gt.f32.partialorder %v1435_v51, 0.0  ;;  %v1563_v57 = vmul.f32 0.1, %v1435_v51 }
 0x193   : > { %1690 = vst [vmem:[%s2694_s20 + $0x110] sm:$0xff] %v1626_v53  ;;  %v1595_v60 = vsel %vm1467_vm6, %v1403_v50, %v1531_v56 }
 0x194   : > { %v959_v54 = vpop.f32.mrb[8].mxu0  ;;  %v1087_v55 = vpop.f32.mrb[8].mxu1  ;;  %v1627_v61 = vsel %vm1499_vm7, %v1435_v51, %v1563_v57  ;;  %1659 = vst [vmem:[%s2694_s20 + $0x18] sm:$0xff] %v1595_v60 }
 0x195   : > { %v961_v58 = vpop.f32.mrb[9].mxu0  ;;  %v1089_v59 = vpop.f32.mrb[9].mxu1  ;;  %1691 = vst [vmem:[%s2694_s20 + $0x118] sm:$0xff] %v1627_v61  ;;  %v1404_v0 = vadd.f32 %v2686_v18, %v959_v54  ;;  %v1436_v1 = vadd.f32 %v2686_v18, %v1087_v55 }
 0x196   : > { %v962_v62 = vpop.f32.mrb[10].mxu0  ;;  %v1090_v63 = vpop.f32.mrb[10].mxu1 }
 0x197   : > { %v964_v2 = vpop.f32.mrb[11].mxu0  ;;  %v1092_v3 = vpop.f32.mrb[11].mxu1  ;;  %vm1468_vm8 = vcmp.gt.f32.partialorder %v1404_v0, 0.0  ;;  %v1532_v4 = vmul.f32 0.1, %v1404_v0  ;;  %vm1500_vm9 = vcmp.gt.f32.partialorder %v1436_v1, 0.0  ;;  %v1405_v6 = vadd.f32 %v2686_v18, %v962_v62 }
 0x198   : > { %v1564_v5 = vmul.f32 0.1, %v1436_v1  ;;  %v1437_v7 = vadd.f32 %v2686_v18, %v1090_v63 }
 0x199   : > { %v1596_v8 = vsel %vm1468_vm8, %v1404_v0, %v1532_v4  ;;  %vm1469_vm10 = vcmp.gt.f32.partialorder %v1405_v6, 0.0  ;;  %v1533_v12 = vmul.f32 0.1, %v1405_v6 }
 0x19a   : > { %v1628_v9 = vsel %vm1500_vm9, %v1436_v1, %v1564_v5  ;;  %1660 = vst [vmem:[%s2694_s20 + $0x20] sm:$0xff] %v1596_v8  ;;  %vm1501_vm11 = vcmp.gt.f32.partialorder %v1437_v7, 0.0  ;;  %v1565_v13 = vmul.f32 0.1, %v1437_v7 }
 0x19b   : > { %1692 = vst [vmem:[%s2694_s20 + $0x120] sm:$0xff] %v1628_v9  ;;  %v1597_v16 = vsel %vm1469_vm10, %v1405_v6, %v1533_v12 }
 0x19c   : > { %v967_v10 = vpop.f32.mrb[12].mxu0  ;;  %v1095_v11 = vpop.f32.mrb[12].mxu1  ;;  %v1629_v17 = vsel %vm1501_vm11, %v1437_v7, %v1565_v13  ;;  %1661 = vst [vmem:[%s2694_s20 + $0x28] sm:$0xff] %v1597_v16 }
 0x19d   : > { %v969_v14 = vpop.f32.mrb[13].mxu0  ;;  %v1097_v15 = vpop.f32.mrb[13].mxu1  ;;  %1693 = vst [vmem:[%s2694_s20 + $0x128] sm:$0xff] %v1629_v17  ;;  %v1406_v21 = vadd.f32 %v2686_v18, %v967_v10  ;;  %v1438_v22 = vadd.f32 %v2686_v18, %v1095_v11 }
 0x19e   : > { %v970_v19 = vpop.f32.mrb[14].mxu0  ;;  %v1098_v20 = vpop.f32.mrb[14].mxu1 }
 0x19f   : > { %v972_v23 = vpop.f32.mrb[15].mxu0  ;;  %v1100_v24 = vpop.f32.mrb[15].mxu1  ;;  %vm1470_vm12 = vcmp.gt.f32.partialorder %v1406_v21, 0.0  ;;  %v1534_v25 = vmul.f32 0.1, %v1406_v21  ;;  %vm1502_vm13 = vcmp.gt.f32.partialorder %v1438_v22, 0.0  ;;  %v1407_v27 = vadd.f32 %v2686_v18, %v970_v19 }
 0x1a0   : > { %v1566_v26 = vmul.f32 0.1, %v1438_v22  ;;  %v1439_v28 = vadd.f32 %v2686_v18, %v1098_v20 }
 0x1a1   : > { %v1598_v29 = vsel %vm1470_vm12, %v1406_v21, %v1534_v25  ;;  %vm1471_vm14 = vcmp.gt.f32.partialorder %v1407_v27, 0.0  ;;  %v1535_v33 = vmul.f32 0.1, %v1407_v27 }
 0x1a2   : > { %v1630_v30 = vsel %vm1502_vm13, %v1438_v22, %v1566_v26  ;;  %1662 = vst [vmem:[%s2694_s20 + $0x30] sm:$0xff] %v1598_v29  ;;  %vm1503_vm15 = vcmp.gt.f32.partialorder %v1439_v28, 0.0  ;;  %v1567_v34 = vmul.f32 0.1, %v1439_v28 }
 0x1a3   : > { %1694 = vst [vmem:[%s2694_s20 + $0x130] sm:$0xff] %v1630_v30  ;;  %v1599_v37 = vsel %vm1471_vm14, %v1407_v27, %v1535_v33 }
 0x1a4   : > { %v975_v31 = vpop.f32.mrb[16].mxu0  ;;  %v1103_v32 = vpop.f32.mrb[16].mxu1  ;;  %v1631_v38 = vsel %vm1503_vm15, %v1439_v28, %v1567_v34  ;;  %1663 = vst [vmem:[%s2694_s20 + $0x38] sm:$0xff] %v1599_v37 }
 0x1a5   : > { %v977_v35 = vpop.f32.mrb[17].mxu0  ;;  %v1105_v36 = vpop.f32.mrb[17].mxu1  ;;  %1695 = vst [vmem:[%s2694_s20 + $0x138] sm:$0xff] %v1631_v38  ;;  %v1408_v41 = vadd.f32 %v2686_v18, %v975_v31  ;;  %v1440_v42 = vadd.f32 %v2686_v18, %v1103_v32 }
 0x1a6   : > { %v978_v39 = vpop.f32.mrb[18].mxu0  ;;  %v1106_v40 = vpop.f32.mrb[18].mxu1 }
 0x1a7   : > { %v980_v43 = vpop.f32.mrb[19].mxu0  ;;  %v1108_v44 = vpop.f32.mrb[19].mxu1  ;;  %vm1472_vm0 = vcmp.gt.f32.partialorder %v1408_v41, 0.0  ;;  %v1536_v45 = vmul.f32 0.1, %v1408_v41  ;;  %vm1504_vm1 = vcmp.gt.f32.partialorder %v1440_v42, 0.0  ;;  %v1409_v47 = vadd.f32 %v2686_v18, %v978_v39 }
 0x1a8   : > { %v1568_v46 = vmul.f32 0.1, %v1440_v42  ;;  %v1441_v48 = vadd.f32 %v2686_v18, %v1106_v40 }
 0x1a9   : > { %v1600_v49 = vsel %vm1472_vm0, %v1408_v41, %v1536_v45  ;;  %vm1473_vm2 = vcmp.gt.f32.partialorder %v1409_v47, 0.0  ;;  %v1537_v53 = vmul.f32 0.1, %v1409_v47 }
 0x1aa   : > { %v1632_v50 = vsel %vm1504_vm1, %v1440_v42, %v1568_v46  ;;  %1664 = vst [vmem:[%s2694_s20 + $0x40] sm:$0xff] %v1600_v49  ;;  %vm1505_vm3 = vcmp.gt.f32.partialorder %v1441_v48, 0.0  ;;  %v1569_v54 = vmul.f32 0.1, %v1441_v48 }
 0x1ab   : > { %1696 = vst [vmem:[%s2694_s20 + $0x140] sm:$0xff] %v1632_v50  ;;  %v1601_v57 = vsel %vm1473_vm2, %v1409_v47, %v1537_v53 }
 0x1ac   : > { %v983_v51 = vpop.f32.mrb[20].mxu0  ;;  %v1111_v52 = vpop.f32.mrb[20].mxu1  ;;  %v1633_v58 = vsel %vm1505_vm3, %v1441_v48, %v1569_v54  ;;  %1665 = vst [vmem:[%s2694_s20 + $0x48] sm:$0xff] %v1601_v57 }
 0x1ad   : > { %v985_v55 = vpop.f32.mrb[21].mxu0  ;;  %v1113_v56 = vpop.f32.mrb[21].mxu1  ;;  %1697 = vst [vmem:[%s2694_s20 + $0x148] sm:$0xff] %v1633_v58  ;;  %v1410_v61 = vadd.f32 %v2686_v18, %v983_v51  ;;  %v1442_v62 = vadd.f32 %v2686_v18, %v1111_v52 }
 0x1ae   : > { %v986_v59 = vpop.f32.mrb[22].mxu0  ;;  %v1114_v60 = vpop.f32.mrb[22].mxu1 }
 0x1af   : > { %v988_v63 = vpop.f32.mrb[23].mxu0  ;;  %v1116_v0 = vpop.f32.mrb[23].mxu1  ;;  %vm1474_vm4 = vcmp.gt.f32.partialorder %v1410_v61, 0.0  ;;  %v1538_v1 = vmul.f32 0.1, %v1410_v61  ;;  %vm1506_vm5 = vcmp.gt.f32.partialorder %v1442_v62, 0.0  ;;  %v1411_v3 = vadd.f32 %v2686_v18, %v986_v59 }
 0x1b0   : > { %v1570_v2 = vmul.f32 0.1, %v1442_v62  ;;  %v1443_v4 = vadd.f32 %v2686_v18, %v1114_v60 }
 0x1b1   : > { %v1602_v5 = vsel %vm1474_vm4, %v1410_v61, %v1538_v1  ;;  %vm1475_vm6 = vcmp.gt.f32.partialorder %v1411_v3, 0.0  ;;  %v1539_v9 = vmul.f32 0.1, %v1411_v3 }
 0x1b2   : > { %v1634_v6 = vsel %vm1506_vm5, %v1442_v62, %v1570_v2  ;;  %1666 = vst [vmem:[%s2694_s20 + $0x50] sm:$0xff] %v1602_v5  ;;  %vm1507_vm7 = vcmp.gt.f32.partialorder %v1443_v4, 0.0  ;;  %v1571_v10 = vmul.f32 0.1, %v1443_v4 }
 0x1b3   : > { %1698 = vst [vmem:[%s2694_s20 + $0x150] sm:$0xff] %v1634_v6  ;;  %v1603_v13 = vsel %vm1475_vm6, %v1411_v3, %v1539_v9 }
 0x1b4   : > { %v991_v7 = vpop.f32.mrb[24].mxu0  ;;  %v1119_v8 = vpop.f32.mrb[24].mxu1  ;;  %v1635_v14 = vsel %vm1507_vm7, %v1443_v4, %v1571_v10  ;;  %1667 = vst [vmem:[%s2694_s20 + $0x58] sm:$0xff] %v1603_v13 }
 0x1b5   : > { %v993_v11 = vpop.f32.mrb[25].mxu0  ;;  %v1121_v12 = vpop.f32.mrb[25].mxu1  ;;  %1699 = vst [vmem:[%s2694_s20 + $0x158] sm:$0xff] %v1635_v14  ;;  %v1412_v17 = vadd.f32 %v2686_v18, %v991_v7  ;;  %v1444_v19 = vadd.f32 %v2686_v18, %v1119_v8 }
 0x1b6   : > { %v994_v15 = vpop.f32.mrb[26].mxu0  ;;  %v1122_v16 = vpop.f32.mrb[26].mxu1 }
 0x1b7   : > { %v996_v20 = vpop.f32.mrb[27].mxu0  ;;  %v1124_v21 = vpop.f32.mrb[27].mxu1  ;;  %vm1476_vm8 = vcmp.gt.f32.partialorder %v1412_v17, 0.0  ;;  %v1540_v22 = vmul.f32 0.1, %v1412_v17  ;;  %vm1508_vm9 = vcmp.gt.f32.partialorder %v1444_v19, 0.0  ;;  %v1413_v24 = vadd.f32 %v2686_v18, %v994_v15 }
 0x1b8   : > { %v1572_v23 = vmul.f32 0.1, %v1444_v19  ;;  %v1445_v25 = vadd.f32 %v2686_v18, %v1122_v16 }
 0x1b9   : > { %v1604_v26 = vsel %vm1476_vm8, %v1412_v17, %v1540_v22  ;;  %vm1477_vm10 = vcmp.gt.f32.partialorder %v1413_v24, 0.0  ;;  %v1541_v30 = vmul.f32 0.1, %v1413_v24 }
 0x1ba   : > { %v1636_v27 = vsel %vm1508_vm9, %v1444_v19, %v1572_v23  ;;  %1668 = vst [vmem:[%s2694_s20 + $0x60] sm:$0xff] %v1604_v26  ;;  %vm1509_vm11 = vcmp.gt.f32.partialorder %v1445_v25, 0.0  ;;  %v1573_v31 = vmul.f32 0.1, %v1445_v25 }
 0x1bb   : > { %1700 = vst [vmem:[%s2694_s20 + $0x160] sm:$0xff] %v1636_v27  ;;  %v1605_v34 = vsel %vm1477_vm10, %v1413_v24, %v1541_v30 }
 0x1bc   : > { %v999_v28 = vpop.f32.mrb[28].mxu0  ;;  %v1127_v29 = vpop.f32.mrb[28].mxu1  ;;  %v1637_v35 = vsel %vm1509_vm11, %v1445_v25, %v1573_v31  ;;  %1669 = vst [vmem:[%s2694_s20 + $0x68] sm:$0xff] %v1605_v34 }
 0x1bd   : > { %v1001_v32 = vpop.f32.mrb[29].mxu0  ;;  %v1129_v33 = vpop.f32.mrb[29].mxu1  ;;  %1701 = vst [vmem:[%s2694_s20 + $0x168] sm:$0xff] %v1637_v35  ;;  %v1414_v38 = vadd.f32 %v2686_v18, %v999_v28  ;;  %v1446_v39 = vadd.f32 %v2686_v18, %v1127_v29 }
 0x1be   : > { %v1002_v36 = vpop.f32.mrb[30].mxu0  ;;  %v1130_v37 = vpop.f32.mrb[30].mxu1 }
 0x1bf   : > { %v1004_v40 = vpop.f32.mrb[31].mxu0  ;;  %v1132_v41 = vpop.f32.mrb[31].mxu1  ;;  %vm1478_vm12 = vcmp.gt.f32.partialorder %v1414_v38, 0.0  ;;  %v1542_v42 = vmul.f32 0.1, %v1414_v38  ;;  %vm1510_vm13 = vcmp.gt.f32.partialorder %v1446_v39, 0.0  ;;  %v1415_v44 = vadd.f32 %v2686_v18, %v1002_v36 }
 0x1c0   : > { %v1574_v43 = vmul.f32 0.1, %v1446_v39  ;;  %v1447_v45 = vadd.f32 %v2686_v18, %v1130_v37 }
 0x1c1   : > { %v1606_v46 = vsel %vm1478_vm12, %v1414_v38, %v1542_v42  ;;  %vm1479_vm14 = vcmp.gt.f32.partialorder %v1415_v44, 0.0  ;;  %v1543_v50 = vmul.f32 0.1, %v1415_v44 }
 0x1c2   : > { %v1638_v47 = vsel %vm1510_vm13, %v1446_v39, %v1574_v43  ;;  %1670 = vst [vmem:[%s2694_s20 + $0x70] sm:$0xff] %v1606_v46  ;;  %vm1511_vm15 = vcmp.gt.f32.partialorder %v1447_v45, 0.0  ;;  %v1575_v51 = vmul.f32 0.1, %v1447_v45 }
 0x1c3   : > { %1702 = vst [vmem:[%s2694_s20 + $0x170] sm:$0xff] %v1638_v47  ;;  %v1607_v54 = vsel %vm1479_vm14, %v1415_v44, %v1543_v50 }
 0x1c4   : > { %v1007_v48 = vpop.f32.mrb[32].mxu0  ;;  %v1135_v49 = vpop.f32.mrb[32].mxu1  ;;  %v1639_v55 = vsel %vm1511_vm15, %v1447_v45, %v1575_v51  ;;  %1671 = vst [vmem:[%s2694_s20 + $0x78] sm:$0xff] %v1607_v54 }
 0x1c5   : > { %v1009_v52 = vpop.f32.mrb[33].mxu0  ;;  %v1137_v53 = vpop.f32.mrb[33].mxu1  ;;  %1703 = vst [vmem:[%s2694_s20 + $0x178] sm:$0xff] %v1639_v55  ;;  %v1416_v58 = vadd.f32 %v2686_v18, %v1007_v48  ;;  %v1448_v59 = vadd.f32 %v2686_v18, %v1135_v49 }
 0x1c6   : > { %v1010_v56 = vpop.f32.mrb[34].mxu0  ;;  %v1138_v57 = vpop.f32.mrb[34].mxu1 }
 0x1c7   : > { %v1012_v60 = vpop.f32.mrb[35].mxu0  ;;  %v1140_v61 = vpop.f32.mrb[35].mxu1  ;;  %vm1480_vm0 = vcmp.gt.f32.partialorder %v1416_v58, 0.0  ;;  %v1544_v62 = vmul.f32 0.1, %v1416_v58  ;;  %vm1512_vm1 = vcmp.gt.f32.partialorder %v1448_v59, 0.0  ;;  %v1417_v0 = vadd.f32 %v2686_v18, %v1010_v56 }
 0x1c8   : > { %v1576_v63 = vmul.f32 0.1, %v1448_v59  ;;  %v1449_v1 = vadd.f32 %v2686_v18, %v1138_v57 }
 0x1c9   : > { %v1608_v2 = vsel %vm1480_vm0, %v1416_v58, %v1544_v62  ;;  %vm1481_vm2 = vcmp.gt.f32.partialorder %v1417_v0, 0.0  ;;  %v1545_v6 = vmul.f32 0.1, %v1417_v0 }
 0x1ca   : > { %v1640_v3 = vsel %vm1512_vm1, %v1448_v59, %v1576_v63  ;;  %1672 = vst [vmem:[%s2694_s20 + $0x80] sm:$0xff] %v1608_v2  ;;  %vm1513_vm3 = vcmp.gt.f32.partialorder %v1449_v1, 0.0  ;;  %v1577_v7 = vmul.f32 0.1, %v1449_v1 }
 0x1cb   : > { %1704 = vst [vmem:[%s2694_s20 + $0x180] sm:$0xff] %v1640_v3  ;;  %v1609_v10 = vsel %vm1481_vm2, %v1417_v0, %v1545_v6 }
 0x1cc   : > { %v1015_v4 = vpop.f32.mrb[36].mxu0  ;;  %v1143_v5 = vpop.f32.mrb[36].mxu1  ;;  %v1641_v11 = vsel %vm1513_vm3, %v1449_v1, %v1577_v7  ;;  %1673 = vst [vmem:[%s2694_s20 + $0x88] sm:$0xff] %v1609_v10 }
 0x1cd   : > { %v1017_v8 = vpop.f32.mrb[37].mxu0  ;;  %v1145_v9 = vpop.f32.mrb[37].mxu1  ;;  %1705 = vst [vmem:[%s2694_s20 + $0x188] sm:$0xff] %v1641_v11  ;;  %v1418_v14 = vadd.f32 %v2686_v18, %v1015_v4  ;;  %v1450_v15 = vadd.f32 %v2686_v18, %v1143_v5 }
 0x1ce   : > { %v1018_v12 = vpop.f32.mrb[38].mxu0  ;;  %v1146_v13 = vpop.f32.mrb[38].mxu1 }
 0x1cf   : > { %v1020_v16 = vpop.f32.mrb[39].mxu0  ;;  %v1148_v17 = vpop.f32.mrb[39].mxu1  ;;  %vm1482_vm4 = vcmp.gt.f32.partialorder %v1418_v14, 0.0  ;;  %v1546_v19 = vmul.f32 0.1, %v1418_v14  ;;  %vm1514_vm5 = vcmp.gt.f32.partialorder %v1450_v15, 0.0  ;;  %v1419_v21 = vadd.f32 %v2686_v18, %v1018_v12 }
 0x1d0   : > { %v1578_v20 = vmul.f32 0.1, %v1450_v15  ;;  %v1451_v22 = vadd.f32 %v2686_v18, %v1146_v13 }
 0x1d1   : > { %v1610_v23 = vsel %vm1482_vm4, %v1418_v14, %v1546_v19  ;;  %vm1483_vm6 = vcmp.gt.f32.partialorder %v1419_v21, 0.0  ;;  %v1547_v27 = vmul.f32 0.1, %v1419_v21 }
 0x1d2   : > { %v1642_v24 = vsel %vm1514_vm5, %v1450_v15, %v1578_v20  ;;  %1674 = vst [vmem:[%s2694_s20 + $0x90] sm:$0xff] %v1610_v23  ;;  %vm1515_vm7 = vcmp.gt.f32.partialorder %v1451_v22, 0.0  ;;  %v1579_v28 = vmul.f32 0.1, %v1451_v22 }
 0x1d3   : > { %1706 = vst [vmem:[%s2694_s20 + $0x190] sm:$0xff] %v1642_v24  ;;  %v1611_v31 = vsel %vm1483_vm6, %v1419_v21, %v1547_v27 }
 0x1d4   : > { %v1023_v25 = vpop.f32.mrb[40].mxu0  ;;  %v1151_v26 = vpop.f32.mrb[40].mxu1  ;;  %v1643_v32 = vsel %vm1515_vm7, %v1451_v22, %v1579_v28  ;;  %1675 = vst [vmem:[%s2694_s20 + $0x98] sm:$0xff] %v1611_v31 }
 0x1d5   : > { %v1025_v29 = vpop.f32.mrb[41].mxu0  ;;  %v1153_v30 = vpop.f32.mrb[41].mxu1  ;;  %1707 = vst [vmem:[%s2694_s20 + $0x198] sm:$0xff] %v1643_v32  ;;  %v1420_v35 = vadd.f32 %v2686_v18, %v1023_v25  ;;  %v1452_v36 = vadd.f32 %v2686_v18, %v1151_v26 }
 0x1d6   : > { %v1026_v33 = vpop.f32.mrb[42].mxu0  ;;  %v1154_v34 = vpop.f32.mrb[42].mxu1 }
 0x1d7   : > { %v1028_v37 = vpop.f32.mrb[43].mxu0  ;;  %v1156_v38 = vpop.f32.mrb[43].mxu1  ;;  %vm1484_vm8 = vcmp.gt.f32.partialorder %v1420_v35, 0.0  ;;  %v1548_v39 = vmul.f32 0.1, %v1420_v35  ;;  %vm1516_vm9 = vcmp.gt.f32.partialorder %v1452_v36, 0.0  ;;  %v1421_v41 = vadd.f32 %v2686_v18, %v1026_v33 }
 0x1d8   : > { %v1580_v40 = vmul.f32 0.1, %v1452_v36  ;;  %v1453_v42 = vadd.f32 %v2686_v18, %v1154_v34 }
 0x1d9   : > { %v1612_v43 = vsel %vm1484_vm8, %v1420_v35, %v1548_v39  ;;  %vm1485_vm10 = vcmp.gt.f32.partialorder %v1421_v41, 0.0  ;;  %v1549_v47 = vmul.f32 0.1, %v1421_v41 }
 0x1da   : > { %v1644_v44 = vsel %vm1516_vm9, %v1452_v36, %v1580_v40  ;;  %1676 = vst [vmem:[%s2694_s20 + $0xa0] sm:$0xff] %v1612_v43  ;;  %vm1517_vm11 = vcmp.gt.f32.partialorder %v1453_v42, 0.0  ;;  %v1581_v48 = vmul.f32 0.1, %v1453_v42 }
 0x1db   : > { %1708 = vst [vmem:[%s2694_s20 + $0x1a0] sm:$0xff] %v1644_v44  ;;  %v1613_v51 = vsel %vm1485_vm10, %v1421_v41, %v1549_v47 }
 0x1dc   : > { %v1031_v45 = vpop.f32.mrb[44].mxu0  ;;  %v1159_v46 = vpop.f32.mrb[44].mxu1  ;;  %v1645_v52 = vsel %vm1517_vm11, %v1453_v42, %v1581_v48  ;;  %1677 = vst [vmem:[%s2694_s20 + $0xa8] sm:$0xff] %v1613_v51 }
 0x1dd   : > { %v1033_v49 = vpop.f32.mrb[45].mxu0  ;;  %v1161_v50 = vpop.f32.mrb[45].mxu1  ;;  %1709 = vst [vmem:[%s2694_s20 + $0x1a8] sm:$0xff] %v1645_v52  ;;  %v1422_v55 = vadd.f32 %v2686_v18, %v1031_v45  ;;  %v1454_v56 = vadd.f32 %v2686_v18, %v1159_v46 }
 0x1de   : > { %v1034_v53 = vpop.f32.mrb[46].mxu0  ;;  %v1162_v54 = vpop.f32.mrb[46].mxu1 }
 0x1df   : > { %v1036_v57 = vpop.f32.mrb[47].mxu0  ;;  %v1164_v58 = vpop.f32.mrb[47].mxu1  ;;  %vm1486_vm12 = vcmp.gt.f32.partialorder %v1422_v55, 0.0  ;;  %v1550_v59 = vmul.f32 0.1, %v1422_v55  ;;  %vm1518_vm13 = vcmp.gt.f32.partialorder %v1454_v56, 0.0  ;;  %v1423_v61 = vadd.f32 %v2686_v18, %v1034_v53 }
 0x1e0   : > { %v1582_v60 = vmul.f32 0.1, %v1454_v56  ;;  %v1455_v62 = vadd.f32 %v2686_v18, %v1162_v54 }
 0x1e1   : > { %v1614_v63 = vsel %vm1486_vm12, %v1422_v55, %v1550_v59  ;;  %vm1487_vm14 = vcmp.gt.f32.partialorder %v1423_v61, 0.0  ;;  %v1551_v3 = vmul.f32 0.1, %v1423_v61 }
 0x1e2   : > { %v1646_v0 = vsel %vm1518_vm13, %v1454_v56, %v1582_v60  ;;  %1678 = vst [vmem:[%s2694_s20 + $0xb0] sm:$0xff] %v1614_v63  ;;  %vm1519_vm15 = vcmp.gt.f32.partialorder %v1455_v62, 0.0  ;;  %v1583_v4 = vmul.f32 0.1, %v1455_v62 }
 0x1e3   : > { %1710 = vst [vmem:[%s2694_s20 + $0x1b0] sm:$0xff] %v1646_v0  ;;  %v1615_v7 = vsel %vm1487_vm14, %v1423_v61, %v1551_v3 }
 0x1e4   : > { %v1039_v1 = vpop.f32.mrb[48].mxu0  ;;  %v1167_v2 = vpop.f32.mrb[48].mxu1  ;;  %v1647_v8 = vsel %vm1519_vm15, %v1455_v62, %v1583_v4  ;;  %1679 = vst [vmem:[%s2694_s20 + $0xb8] sm:$0xff] %v1615_v7 }
 0x1e5   : > { %v1041_v5 = vpop.f32.mrb[49].mxu0  ;;  %v1169_v6 = vpop.f32.mrb[49].mxu1  ;;  %1711 = vst [vmem:[%s2694_s20 + $0x1b8] sm:$0xff] %v1647_v8  ;;  %v1424_v11 = vadd.f32 %v2686_v18, %v1039_v1  ;;  %v1456_v12 = vadd.f32 %v2686_v18, %v1167_v2 }
 0x1e6   : > { %v1042_v9 = vpop.f32.mrb[50].mxu0  ;;  %v1170_v10 = vpop.f32.mrb[50].mxu1 }
 0x1e7   : > { %v1044_v13 = vpop.f32.mrb[51].mxu0  ;;  %v1172_v14 = vpop.f32.mrb[51].mxu1  ;;  %vm1488_vm0 = vcmp.gt.f32.partialorder %v1424_v11, 0.0  ;;  %v1552_v15 = vmul.f32 0.1, %v1424_v11  ;;  %vm1520_vm1 = vcmp.gt.f32.partialorder %v1456_v12, 0.0  ;;  %v1425_v17 = vadd.f32 %v2686_v18, %v1042_v9 }
 0x1e8   : > { %v1584_v16 = vmul.f32 0.1, %v1456_v12  ;;  %v1457_v19 = vadd.f32 %v2686_v18, %v1170_v10 }
 0x1e9   : > { %v1616_v20 = vsel %vm1488_vm0, %v1424_v11, %v1552_v15  ;;  %vm1489_vm2 = vcmp.gt.f32.partialorder %v1425_v17, 0.0  ;;  %v1553_v24 = vmul.f32 0.1, %v1425_v17 }
 0x1ea   : > { %v1648_v21 = vsel %vm1520_vm1, %v1456_v12, %v1584_v16  ;;  %1680 = vst [vmem:[%s2694_s20 + $0xc0] sm:$0xff] %v1616_v20  ;;  %vm1521_vm3 = vcmp.gt.f32.partialorder %v1457_v19, 0.0  ;;  %v1585_v25 = vmul.f32 0.1, %v1457_v19 }
 0x1eb   : > { %1712 = vst [vmem:[%s2694_s20 + $0x1c0] sm:$0xff] %v1648_v21  ;;  %v1617_v28 = vsel %vm1489_vm2, %v1425_v17, %v1553_v24 }
 0x1ec   : > { %v1047_v22 = vpop.f32.mrb[52].mxu0  ;;  %v1175_v23 = vpop.f32.mrb[52].mxu1  ;;  %v1649_v29 = vsel %vm1521_vm3, %v1457_v19, %v1585_v25  ;;  %1681 = vst [vmem:[%s2694_s20 + $0xc8] sm:$0xff] %v1617_v28 }
 0x1ed   : > { %v1049_v26 = vpop.f32.mrb[53].mxu0  ;;  %v1177_v27 = vpop.f32.mrb[53].mxu1  ;;  %1713 = vst [vmem:[%s2694_s20 + $0x1c8] sm:$0xff] %v1649_v29  ;;  %v1426_v32 = vadd.f32 %v2686_v18, %v1047_v22  ;;  %v1458_v33 = vadd.f32 %v2686_v18, %v1175_v23 }
 0x1ee   : > { %v1050_v30 = vpop.f32.mrb[54].mxu0  ;;  %v1178_v31 = vpop.f32.mrb[54].mxu1 }
 0x1ef   : > { %v1052_v34 = vpop.f32.mrb[55].mxu0  ;;  %v1180_v35 = vpop.f32.mrb[55].mxu1  ;;  %vm1490_vm4 = vcmp.gt.f32.partialorder %v1426_v32, 0.0  ;;  %v1554_v36 = vmul.f32 0.1, %v1426_v32  ;;  %vm1522_vm5 = vcmp.gt.f32.partialorder %v1458_v33, 0.0  ;;  %v1427_v38 = vadd.f32 %v2686_v18, %v1050_v30 }
 0x1f0   : > { %v1586_v37 = vmul.f32 0.1, %v1458_v33  ;;  %v1459_v39 = vadd.f32 %v2686_v18, %v1178_v31 }
 0x1f1   : > { %v1618_v40 = vsel %vm1490_vm4, %v1426_v32, %v1554_v36  ;;  %vm1491_vm6 = vcmp.gt.f32.partialorder %v1427_v38, 0.0  ;;  %v1555_v44 = vmul.f32 0.1, %v1427_v38 }
 0x1f2   : > { %v1650_v41 = vsel %vm1522_vm5, %v1458_v33, %v1586_v37  ;;  %1682 = vst [vmem:[%s2694_s20 + $0xd0] sm:$0xff] %v1618_v40  ;;  %vm1523_vm7 = vcmp.gt.f32.partialorder %v1459_v39, 0.0  ;;  %v1587_v45 = vmul.f32 0.1, %v1459_v39 }
 0x1f3   : > { %1714 = vst [vmem:[%s2694_s20 + $0x1d0] sm:$0xff] %v1650_v41  ;;  %v1619_v48 = vsel %vm1491_vm6, %v1427_v38, %v1555_v44 }
 0x1f4   : > { %v1055_v42 = vpop.f32.mrb[56].mxu0  ;;  %v1183_v43 = vpop.f32.mrb[56].mxu1  ;;  %v1651_v49 = vsel %vm1523_vm7, %v1459_v39, %v1587_v45  ;;  %1683 = vst [vmem:[%s2694_s20 + $0xd8] sm:$0xff] %v1619_v48 }
 0x1f5   : > { %v1057_v46 = vpop.f32.mrb[57].mxu0  ;;  %v1185_v47 = vpop.f32.mrb[57].mxu1  ;;  %1715 = vst [vmem:[%s2694_s20 + $0x1d8] sm:$0xff] %v1651_v49  ;;  %v1428_v52 = vadd.f32 %v2686_v18, %v1055_v42  ;;  %v1460_v53 = vadd.f32 %v2686_v18, %v1183_v43 }
 0x1f6   : > { %v1058_v50 = vpop.f32.mrb[58].mxu0  ;;  %v1186_v51 = vpop.f32.mrb[58].mxu1 }
 0x1f7   : > { %v1060_v54 = vpop.f32.mrb[59].mxu0  ;;  %v1188_v55 = vpop.f32.mrb[59].mxu1  ;;  %vm1492_vm8 = vcmp.gt.f32.partialorder %v1428_v52, 0.0  ;;  %v1556_v56 = vmul.f32 0.1, %v1428_v52  ;;  %vm1524_vm9 = vcmp.gt.f32.partialorder %v1460_v53, 0.0  ;;  %v1429_v58 = vadd.f32 %v2686_v18, %v1058_v50 }
 0x1f8   : > { %v1588_v57 = vmul.f32 0.1, %v1460_v53  ;;  %v1461_v59 = vadd.f32 %v2686_v18, %v1186_v51 }
 0x1f9   : > { %v1620_v60 = vsel %vm1492_vm8, %v1428_v52, %v1556_v56  ;;  %vm1493_vm10 = vcmp.gt.f32.partialorder %v1429_v58, 0.0  ;;  %v1557_v0 = vmul.f32 0.1, %v1429_v58 }
 0x1fa   : > { %v1652_v61 = vsel %vm1524_vm9, %v1460_v53, %v1588_v57  ;;  %1684 = vst [vmem:[%s2694_s20 + $0xe0] sm:$0xff] %v1620_v60  ;;  %vm1525_vm11 = vcmp.gt.f32.partialorder %v1461_v59, 0.0  ;;  %v1589_v1 = vmul.f32 0.1, %v1461_v59 }
 0x1fb   : > { %1716 = vst [vmem:[%s2694_s20 + $0x1e0] sm:$0xff] %v1652_v61  ;;  %v1621_v4 = vsel %vm1493_vm10, %v1429_v58, %v1557_v0 }
 0x1fc   : > { %v1063_v62 = vpop.f32.mrb[60].mxu0  ;;  %v1191_v63 = vpop.f32.mrb[60].mxu1  ;;  %v1653_v5 = vsel %vm1525_vm11, %v1461_v59, %v1589_v1  ;;  %1685 = vst [vmem:[%s2694_s20 + $0xe8] sm:$0xff] %v1621_v4 }
 0x1fd   : > { %v1065_v2 = vpop.f32.mrb[61].mxu0  ;;  %v1193_v3 = vpop.f32.mrb[61].mxu1  ;;  %1717 = vst [vmem:[%s2694_s20 + $0x1e8] sm:$0xff] %v1653_v5  ;;  %v1430_v8 = vadd.f32 %v2686_v18, %v1063_v62  ;;  %v1462_v9 = vadd.f32 %v2686_v18, %v1191_v63 }
 0x1fe   : > { %v1066_v6 = vpop.f32.mrb[62].mxu0  ;;  %v1194_v7 = vpop.f32.mrb[62].mxu1 }
 0x1ff   : > { %v1068_v10 = vpop.f32.mrb[63].mxu0  ;;  %v1196_v11 = vpop.f32.mrb[63].mxu1  ;;  %vm1494_vm12 = vcmp.gt.f32.partialorder %v1430_v8, 0.0  ;;  %v1558_v12 = vmul.f32 0.1, %v1430_v8  ;;  %vm1526_vm13 = vcmp.gt.f32.partialorder %v1462_v9, 0.0  ;;  %v1431_v14 = vadd.f32 %v2686_v18, %v1066_v6 }
 0x200   : > { %v1590_v13 = vmul.f32 0.1, %v1462_v9  ;;  %v1463_v15 = vadd.f32 %v2686_v18, %v1194_v7 }
 0x201   : > { %v1622_v16 = vsel %vm1494_vm12, %v1430_v8, %v1558_v12  ;;  %vm1495_vm14 = vcmp.gt.f32.partialorder %v1431_v14, 0.0  ;;  %v1559_v19 = vmul.f32 0.1, %v1431_v14 }
 0x202   : > { %v1654_v17 = vsel %vm1526_vm13, %v1462_v9, %v1590_v13  ;;  %1686 = vst [vmem:[%s2694_s20 + $0xf0] sm:$0xff] %v1622_v16  ;;  %vm1527_vm15 = vcmp.gt.f32.partialorder %v1463_v15, 0.0  ;;  %v1591_v20 = vmul.f32 0.1, %v1463_v15 }
 0x203   : > { %1718 = vst [vmem:[%s2694_s20 + $0x1f0] sm:$0xff] %v1654_v17  ;;  %v1623_v18 = vsel %vm1495_vm14, %v1431_v14, %v1559_v19 }
 0x204   : > { %v1655_v21 = vsel %vm1527_vm15, %v1463_v15, %v1591_v20  ;;  %1687 = vst [vmem:[%s2694_s20 + $0xf8] sm:$0xff] %v1623_v18 }
 0x205   : > { %1719 = vst [vmem:[%s2694_s20 + $0x1f8] sm:$0xff] %v1655_v21 }
 0x206   : > { %2287 = shalt.err (!%p2284_p5)
}
 0x207   : > { %s2288_s21 = scalar_lea.hbm %s2823_s8, 8192  ;;  %s2292_s25 = scalar_lea.hbm %s2878_s3, 204800 }
 0x208   : > { %p2289_p9 = scmp.ne.s32.totalorder %s2823_s8, %s2288_s21  ;;  %p2293_p3 = scmp.lt.u32.totalorder %s2823_s8, %s2878_s3 }
 0x209   : > { %p2294_p7 = scmp.lt.u32.totalorder %s2292_s25, %s2288_s21  ;;  %p2296_p1 = scmp.lt.u32.totalorder %s2288_s21, %s2823_s8 }
 0x20a   : > { %p2290_p12 = pnand %p2289_p9, %p2519_p8 }
 0x20b   : > { %p2295_p10 = por %p2294_p7, %p2293_p3 }
 0x20c   : > { %p2291_p11 = pneg %p2290_p12 }
 0x20d   : > { %p2297_p2 = por %p2296_p1, %p2295_p10 }
 0x20f   : > { %p2298_p4 = pnand %p2297_p2, %p2291_p11 }
 0x211   : > { %2301 = shalt.err (!%p2298_p4)
}
 0x212   : > { %s2371_s20 = smov 128   ;;  %s2372_s22 = smov 8  }
 0x213   : > { %1995 = dma.vmem_to_hbm [thread:$0]  (%p2519_p8), %s2825_s24, 8192, %s2823_s8, %s1721_s26, %s2371_s20, %s2371_s20, %s2372_s22  }
 0x214 PF: > { %p2017_p6 = scmp.ge.s32.totalorder %s2360_s17, 2  ;;  %s1750_s15 = sand.u32 1, %s2340_s12  }
 0x215   : > { %p2895_p13 = scmp.ne.s32.totalorder %s2886_s23, 0  ;;  %s1751_s7 = scalar_lea.sflag [#allocation4], %s1750_s15 }
 0x217   : > { %p2009_p0 = pnand %p2017_p6, %p2895_p13 }
 0x219   : > { %2335 = dma.done.wait (!%p2009_p0), %s1751_s7, 8192  }
 0x21a   : > { %2337 = vsyncadd (!%p2009_p0), %s1751_s7, 4294959104  ;;  %s20_s17 = sadd.s32 1, %s2360_s17   ;;  %s2896_s12 = smov %s2344_s13 }
 0x21b   : > { %p17_p5 = scmp.ge.s32.totalorder %s20_s17, 27   ;;  %s2897_s13 = smov %s2348_s14 }
 0x21c   : > { %s2898_s14 = smov %s2528_s4  ;;  %s2899_s15 = smov %s2356_s16 }
 0x21d   : > { %s2900_s16 = smov %s2902_s18  ;;  %19 = sbr.rel (!%p17_p5) target bundleno = 7 (0x7), region = 95 }
 0x224   :  { %1756 = vsyncpa [#allocation3], 1 }
 0x225   :  { %1758 = vsyncpa [#allocation3 + $0x1], 1 }
 0x226   :  { %1759 = vsyncpa [#allocation6], 1 }
 0x227   :  { %1760 = vsyncpa [#allocation4], 1 }
 0x228   :  { %1762 = vsyncpa [#allocation4 + $0x1], 1 }

</bundles_post_ra>
